<compile_context>
chip_gen: v7x
topology: tpu7x:2x2x1
jax: 0.10.0
libtpu: 0.0.40
codegen_flags: <defaults>
</compile_context>

<pallas_src>
import math

import jax
import jax.numpy as jnp
from jax.experimental import pallas as pl
from jax.experimental.pallas import tpu as pltpu

NEG_SLOPE = 0.01   # torch.nn.LeakyReLU default negative_slope
LANE = 128
TB_CAP = 512       # max batch-tile rows (VMEM stays ~10 MiB at this size)


def _round_up(n, m):
    return ((n + m - 1) // m) * m


def _leaky_relu(x):
    # Valid for 0 < slope < 1: max(x, slope*x) == LeakyReLU(x).
    return jnp.maximum(x, NEG_SLOPE * x)


def discriminator_kernel(x_ref,
                         w1_ref, b1_ref,
                         w2_ref, b2_ref,
                         w3_ref, b3_ref,
                         w4_ref, b4_ref,
                         o_ref):
    """Fused 4-layer MLP: bf16 operands feed the MXU, f32 accumulation,
    LeakyReLU on the VPU.  Dropout(0.25) == identity (eval mode)."""
    h = x_ref[...].astype(jnp.bfloat16)                                    # (TB, 800)

    h = jnp.dot(h, w1_ref[...], preferred_element_type=jnp.float32) + b1_ref[...]
    h = _leaky_relu(h).astype(jnp.bfloat16)                                # (TB, 512)

    h = jnp.dot(h, w2_ref[...], preferred_element_type=jnp.float32) + b2_ref[...]
    h = _leaky_relu(h).astype(jnp.bfloat16)                                # (TB, 512)

    h = jnp.dot(h, w3_ref[...], preferred_element_type=jnp.float32) + b3_ref[...]
    h = _leaky_relu(h).astype(jnp.bfloat16)                                # (TB, 128)

    # Final layer padded to 128 output lanes -> lane-dense, unmasked bf16 store.
    # Only column 0 is the real logit (padded weight/bias columns are zero).
    o_ref[...] = (jnp.dot(h, w4_ref[...], preferred_element_type=jnp.float32)
                  + b4_ref[...]).astype(jnp.bfloat16)


def init_params(key, input_size=800):
    """Unpadded f32 params mirroring torch.nn.Linear default init
    (U[-1/sqrt(in), 1/sqrt(in)]).  Weights stored as (in_features, out_features).
    NOTE: torch stores nn.Linear weights as (out, in) -- transpose before use."""
    dims = [(input_size, 500), (500, 500), (500, 100), (100, 1)]
    params = []
    for fin, fout in dims:
        key, kw, kb = jax.random.split(key, 3)
        bound = 1.0 / math.sqrt(fin)
        w = jax.random.uniform(kw, (fin, fout), jnp.float32, -bound, bound)
        b = jax.random.uniform(kb, (1, fout), jnp.float32, -bound, bound)
        params.append((w, b))
    return params


def pad_params_for_kernel(params):
    """Zero-pad hidden/output dims to lane multiples (inert through
    Linear + LeakyReLU) and cast weights to bf16; biases stay f32.
    Layer 1's input dim (800) is deliberately NOT padded (no wasted K)."""
    padded = []
    for idx, (w, b) in enumerate(params):
        fin, fout = w.shape
        fin_p = fin if idx == 0 else _round_up(fin, LANE)
        fout_p = _round_up(fout, LANE)
        wp = jnp.zeros((fin_p, fout_p), jnp.float32).at[:fin, :fout].set(w)
        bp = jnp.zeros((1, fout_p), jnp.float32).at[:, :fout].set(b)
        padded.append((wp.astype(jnp.bfloat16), bp))
    return padded


def discriminator_forward(x_nchw, kernel_params):
    """x_nchw: (B, C, H, W) with C*H*W == input_size. Returns squeezed logits."""
    (w1, b1), (w2, b2), (w3, b3), (w4, b4) = kernel_params

    B = x_nchw.shape[0]
    x2d = x_nchw.reshape(B, -1)                       # == x.view(B, -1); free under jit
    F = x2d.shape[1]
    assert F == w1.shape[0], (F, w1.shape)
    OUT_P = w4.shape[1]

    # Batch tiling: multiples of 16 rows (bf16 sublane packing).  For B > 16
    # use >= 2 grid steps (v7x 2-TC sharding) with tiles as large as possible
    # up to TB_CAP rows to amortize the ~0.35 us per-step pipeline overhead.
    if B <= 16:
        TB = _round_up(max(B, 1), 16)
    else:
        TB = min(TB_CAP, _round_up((B + 1) // 2, 16))
    Bp = _round_up(B, TB)
    if Bp != B:
        x2d = jnp.pad(x2d, ((0, Bp - B), (0, 0)))     # zero rows are inert, dropped later

    def resident(arr):
        # Weights/biases: constant index_map -> DMA'd once, VMEM-resident.
        # (pipeline_mode=pl.Buffered(1) would halve their buffering; skipped —
        #  ~1.5 MiB total is negligible at this TB.)
        return pl.BlockSpec(arr.shape, lambda i: (0, 0))

    flops = 2 * Bp * sum(int(w.shape[0]) * int(w.shape[1]) for w in (w1, w2, w3, w4))
    param_bytes = sum(int(a.size) * a.dtype.itemsize
                      for a in (w1, b1, w2, b2, w3, b3, w4, b4))
    bytes_accessed = (param_bytes
                      + Bp * F * x2d.dtype.itemsize    # input read
                      + Bp * OUT_P * 2)                # bf16 output write

    out = pl.pallas_call(
        discriminator_kernel,
        out_shape=jax.ShapeDtypeStruct((Bp, OUT_P), jnp.bfloat16),
        grid=(Bp // TB,),
        in_specs=[
            pl.BlockSpec((TB, F), lambda i: (i, 0)),   # F == full last dim (800)
            resident(w1), resident(b1),
            resident(w2), resident(b2),
            resident(w3), resident(b3),
            resident(w4), resident(b4),
        ],
        out_specs=pl.BlockSpec((TB, OUT_P), lambda i: (i, 0)),
        compiler_params=pltpu.CompilerParams(
            dimension_semantics=("parallel",),
            vmem_limit_bytes=32 * 1024 * 1024,
        ),
        cost_estimate=pl.CostEstimate(flops=flops, transcendentals=0,
                                      bytes_accessed=bytes_accessed),
    )(x2d, w1, b1, w2, b2, w3, b3, w4, b4)

    # Column 0 of the padded output is the logit; drop batch padding, then
    # squeeze() to match torch (-> (B,) or a scalar if B == 1).
    return jnp.squeeze(out[:B, 0].astype(jnp.float32))


def reference_forward(x_nchw, params):
    """Pure-JAX f32 reference (unpadded weights) for correctness checking."""
    B = x_nchw.shape[0]
    h = x_nchw.reshape(B, -1).astype(jnp.float32)
    (w1, b1), (w2, b2), (w3, b3), (w4, b4) = params
    h = _leaky_relu(h @ w1 + b1)
    h = _leaky_relu(h @ w2 + b2)
    h = _leaky_relu(h @ w3 + b3)
    h = h @ w4 + b4
    return jnp.squeeze(h)


if __name__ == "__main__":
    key = jax.random.PRNGKey(0)
    kx, kp = jax.random.split(key)

    # BCICIV2a: input_size = 800 -> x of shape (B, C, H, W) = (2, 4, 10, 20)
    B, C, H, W = 2, 4, 10, 20
    x = jax.random.normal(kx, (B, C, H, W), jnp.float32)

    params = init_params(kp, input_size=C * H * W)
    kernel_params = pad_params_for_kernel(params)

    fwd = jax.jit(discriminator_forward)
    y = jax.block_until_ready(fwd(x, kernel_params))
    y_ref = reference_forward(x, params)

    assert y.shape == (B,), y.shape
    # bf16 weights/activations/output -> loosened tolerance vs f32 reference.
    assert jnp.allclose(y, y_ref, atol=5e-2, rtol=5e-2), (y, y_ref)

    print("KERNEL_OK")
</pallas_src>

<mosaic_0001>
module attributes {stable_mosaic.version = 11 : i64} {
  func.func @discriminator_kernel(%arg0: i32, %arg1: memref<16x800xf32, #tpu.memory_space<vmem>>, %arg2: memref<800x512xbf16, #tpu.memory_space<vmem>>, %arg3: memref<1x512xf32, #tpu.memory_space<vmem>>, %arg4: memref<512x512xbf16, #tpu.memory_space<vmem>>, %arg5: memref<1x512xf32, #tpu.memory_space<vmem>>, %arg6: memref<512x128xbf16, #tpu.memory_space<vmem>>, %arg7: memref<1x128xf32, #tpu.memory_space<vmem>>, %arg8: memref<128x128xbf16, #tpu.memory_space<vmem>>, %arg9: memref<1x128xf32, #tpu.memory_space<vmem>>, %arg10: memref<16x128xbf16, #tpu.memory_space<vmem>>) attributes {dimension_semantics = [#tpu.dimension_semantics<parallel>], iteration_bounds = array<i64: 1>, scalar_prefetch = 0 : i64, scratch_operands = 0 : i64, tpu.core_type = #tpu.core_type<tc>, window_params = [{transform_indices = @transform_0, window_bounds = array<i64: 16, 800>}, {pipeline_mode = #tpu.pipeline_mode<synchronous>, transform_indices = @transform_1, window_bounds = array<i64: 800, 512>}, {pipeline_mode = #tpu.pipeline_mode<synchronous>, transform_indices = @transform_2, window_bounds = array<i64: 1, 512>}, {pipeline_mode = #tpu.pipeline_mode<synchronous>, transform_indices = @transform_3, window_bounds = array<i64: 512, 512>}, {pipeline_mode = #tpu.pipeline_mode<synchronous>, transform_indices = @transform_4, window_bounds = array<i64: 1, 512>}, {pipeline_mode = #tpu.pipeline_mode<synchronous>, transform_indices = @transform_5, window_bounds = array<i64: 512, 128>}, {pipeline_mode = #tpu.pipeline_mode<synchronous>, transform_indices = @transform_6, window_bounds = array<i64: 1, 128>}, {pipeline_mode = #tpu.pipeline_mode<synchronous>, transform_indices = @transform_7, window_bounds = array<i64: 128, 128>}, {pipeline_mode = #tpu.pipeline_mode<synchronous>, transform_indices = @transform_8, window_bounds = array<i64: 1, 128>}, {transform_indices = @transform_9, window_bounds = array<i64: 16, 128>}]} {
    %c0 = arith.constant 0 : index
    %c0_0 = arith.constant 0 : index
    %0 = vector.load %arg1[%c0, %c0_0] : memref<16x800xf32, #tpu.memory_space<vmem>>, vector<16x800xf32>
    %1 = arith.truncf %0 : vector<16x800xf32> to vector<16x800xbf16>
    %c0_1 = arith.constant 0 : index
    %c0_2 = arith.constant 0 : index
    %2 = vector.load %arg2[%c0_1, %c0_2] : memref<800x512xbf16, #tpu.memory_space<vmem>>, vector<800x512xbf16>
    %cst = arith.constant dense<0.000000e+00> : vector<16x512xf32>
    %3 = tpu.matmul %1, %2, %cst {dimension_numbers = #tpu.dot_dimension_numbers<[1], [0], [0], [1], [0, 0, 1, 1], [], []>} : vector<16x800xbf16>, vector<800x512xbf16>, vector<16x512xf32> -> vector<16x512xf32>
    %c0_3 = arith.constant 0 : index
    %c0_4 = arith.constant 0 : index
    %4 = vector.load %arg3[%c0_3, %c0_4] : memref<1x512xf32, #tpu.memory_space<vmem>>, vector<1x512xf32>
    %5 = vector.broadcast %4 : vector<1x512xf32> to vector<16x512xf32>
    %6 = arith.addf %3, %5 : vector<16x512xf32>
    %cst_5 = arith.constant 0.00999999977 : f32
    %7 = vector.broadcast %cst_5 : f32 to vector<16x512xf32>
    %8 = arith.mulf %7, %6 : vector<16x512xf32>
    %9 = arith.maximumf %6, %8 : vector<16x512xf32>
    %10 = arith.truncf %9 : vector<16x512xf32> to vector<16x512xbf16>
    %c0_6 = arith.constant 0 : index
    %c0_7 = arith.constant 0 : index
    %11 = vector.load %arg4[%c0_6, %c0_7] : memref<512x512xbf16, #tpu.memory_space<vmem>>, vector<512x512xbf16>
    %cst_8 = arith.constant dense<0.000000e+00> : vector<16x512xf32>
    %12 = tpu.matmul %10, %11, %cst_8 {dimension_numbers = #tpu.dot_dimension_numbers<[1], [0], [0], [1], [0, 0, 1, 1], [], []>} : vector<16x512xbf16>, vector<512x512xbf16>, vector<16x512xf32> -> vector<16x512xf32>
    %c0_9 = arith.constant 0 : index
    %c0_10 = arith.constant 0 : index
    %13 = vector.load %arg5[%c0_9, %c0_10] : memref<1x512xf32, #tpu.memory_space<vmem>>, vector<1x512xf32>
    %14 = vector.broadcast %13 : vector<1x512xf32> to vector<16x512xf32>
    %15 = arith.addf %12, %14 : vector<16x512xf32>
    %cst_11 = arith.constant 0.00999999977 : f32
    %16 = vector.broadcast %cst_11 : f32 to vector<16x512xf32>
    %17 = arith.mulf %16, %15 : vector<16x512xf32>
    %18 = arith.maximumf %15, %17 : vector<16x512xf32>
    %19 = arith.truncf %18 : vector<16x512xf32> to vector<16x512xbf16>
    %c0_12 = arith.constant 0 : index
    %c0_13 = arith.constant 0 : index
    %20 = vector.load %arg6[%c0_12, %c0_13] : memref<512x128xbf16, #tpu.memory_space<vmem>>, vector<512x128xbf16>
    %cst_14 = arith.constant dense<0.000000e+00> : vector<16x128xf32>
    %21 = tpu.matmul %19, %20, %cst_14 {dimension_numbers = #tpu.dot_dimension_numbers<[1], [0], [0], [1], [0, 0, 1, 1], [], []>} : vector<16x512xbf16>, vector<512x128xbf16>, vector<16x128xf32> -> vector<16x128xf32>
    %c0_15 = arith.constant 0 : index
    %c0_16 = arith.constant 0 : index
    %22 = vector.load %arg7[%c0_15, %c0_16] : memref<1x128xf32, #tpu.memory_space<vmem>>, vector<1x128xf32>
    %23 = vector.broadcast %22 : vector<1x128xf32> to vector<16x128xf32>
    %24 = arith.addf %21, %23 : vector<16x128xf32>
    %cst_17 = arith.constant 0.00999999977 : f32
    %25 = vector.broadcast %cst_17 : f32 to vector<16x128xf32>
    %26 = arith.mulf %25, %24 : vector<16x128xf32>
    %27 = arith.maximumf %24, %26 : vector<16x128xf32>
    %28 = arith.truncf %27 : vector<16x128xf32> to vector<16x128xbf16>
    %c0_18 = arith.constant 0 : index
    %c0_19 = arith.constant 0 : index
    %29 = vector.load %arg8[%c0_18, %c0_19] : memref<128x128xbf16, #tpu.memory_space<vmem>>, vector<128x128xbf16>
    %cst_20 = arith.constant dense<0.000000e+00> : vector<16x128xf32>
    %30 = tpu.matmul %28, %29, %cst_20 {dimension_numbers = #tpu.dot_dimension_numbers<[1], [0], [0], [1], [0, 0, 1, 1], [], []>} : vector<16x128xbf16>, vector<128x128xbf16>, vector<16x128xf32> -> vector<16x128xf32>
    %c0_21 = arith.constant 0 : index
    %c0_22 = arith.constant 0 : index
    %31 = vector.load %arg9[%c0_21, %c0_22] : memref<1x128xf32, #tpu.memory_space<vmem>>, vector<1x128xf32>
    %32 = vector.broadcast %31 : vector<1x128xf32> to vector<16x128xf32>
    %33 = arith.addf %30, %32 : vector<16x128xf32>
    %34 = arith.truncf %33 : vector<16x128xf32> to vector<16x128xbf16>
    %c0_23 = arith.constant 0 : index
    %c0_24 = arith.constant 0 : index
    %35 = vector.load %arg10[%c0_23, %c0_24] : memref<16x128xbf16, #tpu.memory_space<vmem>>, vector<16x128xbf16>
    tpu.vector_store %arg10[%c0_23, %c0_24], %34 {strides = array<i32>} : memref<16x128xbf16, #tpu.memory_space<vmem>>, vector<16x128xbf16>,
    return
  }
  func.func @transform_0(%arg0: i32) -> (i32, i32) {
    %c0_i32 = arith.constant 0 : i32
    %c0_i32_0 = arith.constant 0 : i32
    return %arg0, %c0_i32 : i32, i32
  }
  func.func @transform_1(%arg0: i32) -> (i32, i32) {
    %c0_i32 = arith.constant 0 : i32
    %c0_i32_0 = arith.constant 0 : i32
    %c0_i32_1 = arith.constant 0 : i32
    return %c0_i32, %c0_i32_0 : i32, i32
  }
  func.func @transform_2(%arg0: i32) -> (i32, i32) {
    %c0_i32 = arith.constant 0 : i32
    %c0_i32_0 = arith.constant 0 : i32
    %c0_i32_1 = arith.constant 0 : i32
    return %c0_i32, %c0_i32_0 : i32, i32
  }
  func.func @transform_3(%arg0: i32) -> (i32, i32) {
    %c0_i32 = arith.constant 0 : i32
    %c0_i32_0 = arith.constant 0 : i32
    %c0_i32_1 = arith.constant 0 : i32
    return %c0_i32, %c0_i32_0 : i32, i32
  }
  func.func @transform_4(%arg0: i32) -> (i32, i32) {
    %c0_i32 = arith.constant 0 : i32
    %c0_i32_0 = arith.constant 0 : i32
    %c0_i32_1 = arith.constant 0 : i32
    return %c0_i32, %c0_i32_0 : i32, i32
  }
  func.func @transform_5(%arg0: i32) -> (i32, i32) {
    %c0_i32 = arith.constant 0 : i32
    %c0_i32_0 = arith.constant 0 : i32
    %c0_i32_1 = arith.constant 0 : i32
    return %c0_i32, %c0_i32_0 : i32, i32
  }
  func.func @transform_6(%arg0: i32) -> (i32, i32) {
    %c0_i32 = arith.constant 0 : i32
    %c0_i32_0 = arith.constant 0 : i32
    %c0_i32_1 = arith.constant 0 : i32
    return %c0_i32, %c0_i32_0 : i32, i32
  }
  func.func @transform_7(%arg0: i32) -> (i32, i32) {
    %c0_i32 = arith.constant 0 : i32
    %c0_i32_0 = arith.constant 0 : i32
    %c0_i32_1 = arith.constant 0 : i32
    return %c0_i32, %c0_i32_0 : i32, i32
  }
  func.func @transform_8(%arg0: i32) -> (i32, i32) {
    %c0_i32 = arith.constant 0 : i32
    %c0_i32_0 = arith.constant 0 : i32
    %c0_i32_1 = arith.constant 0 : i32
    return %c0_i32, %c0_i32_0 : i32, i32
  }
  func.func @transform_9(%arg0: i32) -> (i32, i32) {
    %c0_i32 = arith.constant 0 : i32
    %c0_i32_0 = arith.constant 0 : i32
    return %arg0, %c0_i32 : i32, i32
  }
}

</mosaic_0001>

<bundles_post_ra>
// kernel: discriminator_forward.1
= control target key start
LH: loop header
LB: loop body
LE: loop exit
PB: predicated region body
PF: predicated region fallthrough
CT: control target
= control target key end

     0   :  { %14 = vsyncpa [#allocation3], 0  ;;  %s4534_s0 = inlined_call_operand.vmem [shape: f32[16,800], index: 0, kind: input, shape index: {}]   ;;  %s4535_s1 = inlined_call_operand.hbm [shape: bf16[800,512], index: 1, kind: input, shape index: {}]   ;;  %s4536_s2 = inlined_call_operand.vmem [shape: f32[1,512], index: 2, kind: input, shape index: {}]   ;;  %s4537_s3 = inlined_call_operand.hbm [shape: bf16[512,512], index: 3, kind: input, shape index: {}]   ;;  %s4538_s4 = inlined_call_operand.vmem [shape: f32[1,512], index: 4, kind: input, shape index: {}]   ;;  %s4539_s5 = inlined_call_operand.vmem [shape: bf16[512,128], index: 5, kind: input, shape index: {}]   ;;  %s4540_s6 = inlined_call_operand.vmem [shape: f32[1,128], index: 6, kind: input, shape index: {}]   ;;  %s4541_s7 = inlined_call_operand.vmem [shape: bf16[128,128], index: 7, kind: input, shape index: {}]   ;;  %s4542_s8 = inlined_call_operand.vmem [shape: f32[1,128], index: 8, kind: input, shape index: {}]   ;;  %s4543_s9 = inlined_call_operand.vmem [shape: bf16[16,128], index: 9, kind: output, shape index: {}]  }
   0x1   :  { %15 = vsyncpa [#allocation5], 0  ;;  %s4221_s30 = smov [#allocation2]   ;;  %s4173_s13 = scalar_lea.hbm %s4535_s1, 25600 }
   0x2   :  { %s23_s10 = sshll.u32 %s4221_s30, 4  ;;  %p4174_p0 = scmp.ne.s32.totalorder %s4535_s1, %s4173_s13  ;;  %s24_s10 = int_to_ptr.vmem [resolvable:$true] %s23_s10 }
   0x3   :  { %p4177_p1 = scmp.lt.u32.totalorder %s4173_s13, %s4535_s1 }
   0x5   :  { %p4179_p2 = pnand %p4177_p1, %p4174_p0 }
   0x7   :  { %4182 = shalt.err (!%p4179_p2)
}
   0x8   :  { %s4183_s18 = scalar_lea.vmem %s24_s10, 25600  ;;  %p4188_p4 = scmp.lt.s32.totalorder %s24_s10, %s24_s10 }
   0x9   :  { %p4184_p3 = scmp.ne.s32.totalorder %s24_s10, %s4183_s18  ;;  %p4189_p5 = scmp.lt.s32.totalorder %s4183_s18, %s4183_s18 }
   0xb   :  { %p4190_p6 = por %p4189_p5, %p4188_p4 }
   0xd   :  { %p4191_p7 = pnand %p4190_p6, %p4184_p3 }
   0xf   :  { %4194 = shalt.err (!%p4191_p7)
}
  0x10   :  { %s4222_s19 = smov 256   ;;  %s4223_s20 = smov 16  }
  0x11   :  { %29 = dma.hbm_to_vmem [thread:$0]  %s4535_s1, 25600, %s24_s10, [#allocation3], %s4222_s19, %s4222_s19, %s4223_s20  }
  0x12   :  { %s4224_s23 = smov [#allocation4]   ;;  %s4195_s27 = scalar_lea.hbm %s4537_s3, 16384 }
  0x13   :  { %s37_s24 = sshll.u32 %s4224_s23, 4  ;;  %p4196_p8 = scmp.ne.s32.totalorder %s4537_s3, %s4195_s27  ;;  %s38_s24 = int_to_ptr.vmem [resolvable:$true] %s37_s24 }
  0x14   :  { %p4199_p9 = scmp.lt.u32.totalorder %s4195_s27, %s4537_s3 }
  0x16   :  { %p4201_p10 = pnand %p4199_p9, %p4196_p8 }
  0x18   :  { %4204 = shalt.err (!%p4201_p10)
}
  0x19   :  { %s4205_s12 = scalar_lea.vmem %s38_s24, 16384  ;;  %p4210_p12 = scmp.lt.s32.totalorder %s38_s24, %s38_s24 }
  0x1a   :  { %p4206_p11 = scmp.ne.s32.totalorder %s38_s24, %s4205_s12  ;;  %p4211_p13 = scmp.lt.s32.totalorder %s4205_s12, %s4205_s12 }
  0x1c   :  { %p4212_p0 = por %p4211_p13, %p4210_p12 }
  0x1e   :  { %p4213_p1 = pnand %p4212_p0, %p4206_p11 }
  0x20   :  { %4216 = shalt.err (!%p4213_p1)
}
  0x21   :  { %43 = dma.hbm_to_vmem [thread:$0]  %s4537_s3, 16384, %s38_s24, [#allocation5], %s4222_s19, %s4222_s19, %s4223_s20  }
  0x22   :  { %4217 = dma.done.wait [#allocation3], 25600  }
  0x23   :  { %4218 = vsyncadd [#allocation3], 4294941696 }
  0x24   :  { %4219 = dma.done.wait [#allocation5], 16384  }
  0x25   :  { %4220 = vsyncadd [#allocation5], 4294950912  ;;  %v4225_v0 = vmov 0   ;;  %v3641_v1 = vld [vmem:[#allocation2 + $0x4] ss:$16 sps:$4 sm:$0xff]   ;;  %v74_v14 = vld [vmem:[%s4534_s0 + $0x68] sm:$0xff] }
  0x26   :  { %1469 = vmatprep.mubr.bf16.mxu1 %v4225_v0  ;;  %v3643_v2 = vld [vmem:[#allocation2 + $0x604] ss:$16 sps:$4 sm:$0xff]   ;;  %1308 = vmatprep.subr.bf16.mxu0 %v3641_v1  ;;  %v3645_v3 = vld [vmem:[#allocation2] ss:$16 sps:$4 sm:$0xff]   ;;  %v3655_v10 = vld [vmem:[#allocation2 + $0x8] ss:$16 sps:$4 sm:$0xff]  }
  0x27   :  { %v3646_v4 = vld [vmem:[#allocation2 + $0x600] ss:$16 sps:$4 sm:$0xff]   ;;  %1437 = vmatprep.subr.bf16.mxu1 %v3643_v2  ;;  %v3647_v5 = vld [vmem:[#allocation2 + $0x24] ss:$16 sps:$4 sm:$0xff]   ;;  %1309 = vmatpush1.bf16.msra.mxu0 %v3645_v3  ;;  %v3657_v11 = vld [vmem:[#allocation2 + $0xc] ss:$16 sps:$4 sm:$0xff]  }
  0x28   :  { %1438 = vmatpush1.bf16.msra.mxu1 %v3646_v4  ;;  %v3649_v6 = vld [vmem:[#allocation2 + $0x624] ss:$16 sps:$4 sm:$0xff]   ;;  %v3651_v7 = vld [vmem:[#allocation2 + $0x20] ss:$16 sps:$4 sm:$0xff]   ;;  %1310 = vmatprep.subr.bf16.mxu0 %v3647_v5  ;;  %vm1304_vm0 = vcmask 261120   ;;  %v62_v52 = vld [vmem:[%s4534_s0 + $0x8] sm:$0xff] }
  0x29   :  { %v3652_v8 = vld [vmem:[#allocation2 + $0x620] ss:$16 sps:$4 sm:$0xff]   ;;  %1439 = vmatprep.subr.bf16.mxu1 %v3649_v6  ;;  %v3653_v9 = vld [vmem:[#allocation2 + $0x44] ss:$16 sps:$4 sm:$0xff]   ;;  %v3663_v17 = vld [vmem:[#allocation2 + $0x2c] ss:$16 sps:$4 sm:$0xff]  }
  0x2a   :  { %v3658_v12 = vld [vmem:[#allocation2 + $0x40] ss:$16 sps:$4 sm:$0xff]   ;;  %v3659_v16 = vld [vmem:[#allocation2 + $0x64] ss:$16 sps:$4 sm:$0xff]   ;;  %v3661_v18 = vld [vmem:[#allocation2 + $0x28] ss:$16 sps:$4 sm:$0xff]  }
  0x2b   :  { %1311 = vmatpush1.bf16.msra.mxu0 %v3651_v7  ;;  %v67_v13 = vld [vmem:[%s4534_s0 + $0x30] sm:$0xff]  ;;  %v3669_v21 = vld [vmem:[#allocation2 + $0x4c] ss:$16 sps:$4 sm:$0xff]   ;;  %v3667_v22 = vld [vmem:[#allocation2 + $0x48] ss:$16 sps:$4 sm:$0xff]   ;;  %vm4227_vm1 = vmmov 0  }
  0x2c   :  { %1440 = vmatpush1.bf16.msra.mxu1 %v3652_v8  ;;  %1312 = vmatprep.subr.bf16.mxu0 %v3653_v9  ;;  %v4309_v15 = vpack.c.bf16 %v74_v14, %v67_v13  ;;  %v3664_v19 = vld [vmem:[#allocation2 + $0x60] ss:$16 sps:$4 sm:$0xff]   ;;  %v3665_v20 = vld [vmem:[#allocation2 + $0x84] ss:$16 sps:$4 sm:$0xff]   ;;  %v3675_v25 = vld [vmem:[#allocation2 + $0x6c] ss:$16 sps:$4 sm:$0xff]  }
  0x2d   :  { %1480 = vmatprep.subr.bf16.mxu1 %v3657_v11  ;;  %v3670_v23 = vld [vmem:[#allocation2 + $0x80] ss:$16 sps:$4 sm:$0xff]   ;;  %v3671_v24 = vld [vmem:[#allocation2 + $0xa4] ss:$16 sps:$4 sm:$0xff]   ;;  %v3673_v26 = vld [vmem:[#allocation2 + $0x68] ss:$16 sps:$4 sm:$0xff]  }
  0x2e   :  { %v3676_v27 = vld [vmem:[#allocation2 + $0xa0] ss:$16 sps:$4 sm:$0xff]   ;;  %v3677_v28 = vld [vmem:[#allocation2 + $0xc4] ss:$16 sps:$4 sm:$0xff]   ;;  %v3681_v29 = vld [vmem:[#allocation2 + $0x8c] ss:$16 sps:$4 sm:$0xff]  }
  0x2f   :  { %3332 = vmatmul.mubr.msk.bf16.vlgmr.msra.gmra.mrb[0].mxu1 %vm1304_vm0, %v4309_v15  ;;  %1313 = vmatpush1.bf16.msra.mxu0 %v3658_v12  ;;  %v3679_v30 = vld [vmem:[#allocation2 + $0x88] ss:$16 sps:$4 sm:$0xff]   ;;  %v3682_v31 = vld [vmem:[#allocation2 + $0xc0] ss:$16 sps:$4 sm:$0xff]   ;;  %v3683_v32 = vld [vmem:[#allocation2 + $0xe4] ss:$16 sps:$4 sm:$0xff]  }
  0x30   :  { %1481 = vmatpush1.bf16.msra.mxu1 %v3655_v10  ;;  %1314 = vmatprep.subr.bf16.mxu0 %v3659_v16  ;;  %v3687_v33 = vld [vmem:[#allocation2 + $0xac] ss:$16 sps:$4 sm:$0xff]   ;;  %v3685_v34 = vld [vmem:[#allocation2 + $0xa8] ss:$16 sps:$4 sm:$0xff]   ;;  %v3688_v35 = vld [vmem:[#allocation2 + $0xe0] ss:$16 sps:$4 sm:$0xff]  }
  0x31   :  { %1482 = vmatprep.subr.bf16.mxu1 %v3663_v17  ;;  %v3689_v36 = vld [vmem:[#allocation2 + $0x104] ss:$16 sps:$4 sm:$0xff]   ;;  %v3693_v37 = vld [vmem:[#allocation2 + $0xcc] ss:$16 sps:$4 sm:$0xff]   ;;  %v3691_v38 = vld [vmem:[#allocation2 + $0xc8] ss:$16 sps:$4 sm:$0xff]  }
  0x32   :  { %v3694_v39 = vld [vmem:[#allocation2 + $0x100] ss:$16 sps:$4 sm:$0xff]   ;;  %v3695_v40 = vld [vmem:[#allocation2 + $0x124] ss:$16 sps:$4 sm:$0xff]   ;;  %v3699_v41 = vld [vmem:[#allocation2 + $0xec] ss:$16 sps:$4 sm:$0xff]  }
  0x33   :  { %1315 = vmatpush1.bf16.msra.mxu0 %v3664_v19  ;;  %v3697_v42 = vld [vmem:[#allocation2 + $0xe8] ss:$16 sps:$4 sm:$0xff]   ;;  %v3700_v43 = vld [vmem:[#allocation2 + $0x120] ss:$16 sps:$4 sm:$0xff]   ;;  %v3701_v44 = vld [vmem:[#allocation2 + $0x144] ss:$16 sps:$4 sm:$0xff]  }
  0x34   :  { %1483 = vmatpush1.bf16.msra.mxu1 %v3661_v18  ;;  %1316 = vmatprep.subr.bf16.mxu0 %v3665_v20  ;;  %v3705_v45 = vld [vmem:[#allocation2 + $0x10c] ss:$16 sps:$4 sm:$0xff]   ;;  %v3703_v46 = vld [vmem:[#allocation2 + $0x108] ss:$16 sps:$4 sm:$0xff]   ;;  %v3706_v47 = vld [vmem:[#allocation2 + $0x140] ss:$16 sps:$4 sm:$0xff]  }
  0x35   :  { %1484 = vmatprep.subr.bf16.mxu1 %v3669_v21  ;;  %v3707_v48 = vld [vmem:[#allocation2 + $0x164] ss:$16 sps:$4 sm:$0xff]   ;;  %v3711_v49 = vld [vmem:[#allocation2 + $0x12c] ss:$16 sps:$4 sm:$0xff]   ;;  %v3709_v50 = vld [vmem:[#allocation2 + $0x128] ss:$16 sps:$4 sm:$0xff]  }
  0x36   :  { %v3712_v51 = vld [vmem:[#allocation2 + $0x160] ss:$16 sps:$4 sm:$0xff]   ;;  %v3713_v54 = vld [vmem:[#allocation2 + $0x184] ss:$16 sps:$4 sm:$0xff]   ;;  %v3717_v56 = vld [vmem:[#allocation2 + $0x14c] ss:$16 sps:$4 sm:$0xff]  }
  0x37   :  { %1317 = vmatpush1.bf16.msra.mxu0 %v3670_v23  ;;  %v69_v53 = vld [vmem:[%s4534_s0 + $0x40] sm:$0xff]  ;;  %v3715_v57 = vld [vmem:[#allocation2 + $0x148] ss:$16 sps:$4 sm:$0xff]   ;;  %v3723_v60 = vld [vmem:[#allocation2 + $0x16c] ss:$16 sps:$4 sm:$0xff]  }
  0x38   :  { %1485 = vmatpush1.bf16.msra.mxu1 %v3667_v22  ;;  %1318 = vmatprep.subr.bf16.mxu0 %v3671_v24  ;;  %v76_v55 = vpack.c.bf16 %v69_v53, %v62_v52  ;;  %v3718_v58 = vld [vmem:[#allocation2 + $0x180] ss:$16 sps:$4 sm:$0xff]   ;;  %v3719_v59 = vld [vmem:[#allocation2 + $0x1a4] ss:$16 sps:$4 sm:$0xff]   ;;  %v3721_v61 = vld [vmem:[#allocation2 + $0x168] ss:$16 sps:$4 sm:$0xff]  }
  0x39   :  { %1486 = vmatprep.subr.bf16.mxu1 %v3675_v25  ;;  %v3724_v62 = vld [vmem:[#allocation2 + $0x1a0] ss:$16 sps:$4 sm:$0xff]   ;;  %v3725_v63 = vld [vmem:[#allocation2 + $0x1c4] ss:$16 sps:$4 sm:$0xff]   ;;  %v3729_v1 = vld [vmem:[#allocation2 + $0x18c] ss:$16 sps:$4 sm:$0xff]  }
  0x3a   :  { %1340 = vmatprep.mubr.bf16.mxu0 %v76_v55  ;;  %1512 = vmatprep.mubr.bf16.mxu1 %v76_v55  ;;  %v3727_v2 = vld [vmem:[#allocation2 + $0x188] ss:$16 sps:$4 sm:$0xff]   ;;  %v3730_v3 = vld [vmem:[#allocation2 + $0x1c0] ss:$16 sps:$4 sm:$0xff]   ;;  %v3731_v4 = vld [vmem:[#allocation2 + $0x1e4] ss:$16 sps:$4 sm:$0xff]  }
  0x3b   :  { %1319 = vmatpush1.bf16.msra.mxu0 %v3676_v27  ;;  %v3735_v5 = vld [vmem:[#allocation2 + $0x1ac] ss:$16 sps:$4 sm:$0xff]   ;;  %v3733_v6 = vld [vmem:[#allocation2 + $0x1a8] ss:$16 sps:$4 sm:$0xff]   ;;  %v3736_v7 = vld [vmem:[#allocation2 + $0x1e0] ss:$16 sps:$4 sm:$0xff]  }
  0x3c   :  { %1487 = vmatpush1.bf16.msra.mxu1 %v3673_v26  ;;  %1320 = vmatprep.subr.bf16.mxu0 %v3677_v28  ;;  %v61_v8 = vld [vmem:[%s4534_s0] sm:$0xff]  ;;  %v68_v9 = vld [vmem:[%s4534_s0 + $0x38] sm:$0xff] }
  0x3d   :  { %1488 = vmatprep.subr.bf16.mxu1 %v3681_v29  ;;  %v3739_v10 = vld [vmem:[#allocation2 + $0x204] ss:$16 sps:$4 sm:$0xff]   ;;  %v3742_v11 = vld [vmem:[#allocation2 + $0x1cc] ss:$16 sps:$4 sm:$0xff]   ;;  %v75_v12 = vpack.c.bf16 %v68_v9, %v61_v8  ;;  %v3737_v13 = vld [vmem:[#allocation2 + $0x200] ss:$16 sps:$4 sm:$0xff]  }
  0x3e   :  { %v3740_v14 = vld [vmem:[#allocation2 + $0x1c8] ss:$16 sps:$4 sm:$0xff]   ;;  %v3745_v16 = vld [vmem:[#allocation2 + $0x224] ss:$16 sps:$4 sm:$0xff]   ;;  %v3748_v17 = vld [vmem:[#allocation2 + $0x1ec] ss:$16 sps:$4 sm:$0xff]  }
  0x3f   :  { %1321 = vmatpush1.bf16.msra.mxu0 %v3682_v31  ;;  %v3743_v18 = vld [vmem:[#allocation2 + $0x220] ss:$16 sps:$4 sm:$0xff]   ;;  %v3746_v19 = vld [vmem:[#allocation2 + $0x1e8] ss:$16 sps:$4 sm:$0xff]   ;;  %v3751_v20 = vld [vmem:[#allocation2 + $0x244] ss:$16 sps:$4 sm:$0xff]  }
  0x40   :  { %1489 = vmatpush1.bf16.msra.mxu1 %v3679_v30  ;;  %1322 = vmatprep.subr.bf16.mxu0 %v3683_v32  ;;  %v3754_v21 = vld [vmem:[#allocation2 + $0x20c] ss:$16 sps:$4 sm:$0xff]   ;;  %v3749_v22 = vld [vmem:[#allocation2 + $0x240] ss:$16 sps:$4 sm:$0xff]   ;;  %v3752_v23 = vld [vmem:[#allocation2 + $0x208] ss:$16 sps:$4 sm:$0xff]  }
  0x41   :  { %1490 = vmatprep.subr.bf16.mxu1 %v3687_v33  ;;  %v3757_v24 = vld [vmem:[#allocation2 + $0x264] ss:$16 sps:$4 sm:$0xff]   ;;  %v3760_v25 = vld [vmem:[#allocation2 + $0x22c] ss:$16 sps:$4 sm:$0xff]   ;;  %v3755_v26 = vld [vmem:[#allocation2 + $0x260] ss:$16 sps:$4 sm:$0xff]  }
  0x42   :  { %v3758_v27 = vld [vmem:[#allocation2 + $0x228] ss:$16 sps:$4 sm:$0xff]   ;;  %v3763_v28 = vld [vmem:[#allocation2 + $0x284] ss:$16 sps:$4 sm:$0xff]   ;;  %v3766_v29 = vld [vmem:[#allocation2 + $0x24c] ss:$16 sps:$4 sm:$0xff]  }
  0x43   :  { %1323 = vmatpush1.bf16.msra.mxu0 %v3688_v35  ;;  %v3761_v30 = vld [vmem:[#allocation2 + $0x280] ss:$16 sps:$4 sm:$0xff]   ;;  %v3764_v31 = vld [vmem:[#allocation2 + $0x248] ss:$16 sps:$4 sm:$0xff]   ;;  %v3769_v32 = vld [vmem:[#allocation2 + $0x2a4] ss:$16 sps:$4 sm:$0xff]  }
  0x44   :  { %1491 = vmatpush1.bf16.msra.mxu1 %v3685_v34  ;;  %1324 = vmatprep.subr.bf16.mxu0 %v3689_v36  ;;  %v3772_v33 = vld [vmem:[#allocation2 + $0x26c] ss:$16 sps:$4 sm:$0xff]   ;;  %v3767_v34 = vld [vmem:[#allocation2 + $0x2a0] ss:$16 sps:$4 sm:$0xff]   ;;  %v3770_v35 = vld [vmem:[#allocation2 + $0x268] ss:$16 sps:$4 sm:$0xff]  }
  0x45   :  { %1492 = vmatprep.subr.bf16.mxu1 %v3693_v37  ;;  %v3775_v36 = vld [vmem:[#allocation2 + $0x2c4] ss:$16 sps:$4 sm:$0xff]   ;;  %v3778_v37 = vld [vmem:[#allocation2 + $0x28c] ss:$16 sps:$4 sm:$0xff]   ;;  %v3791_v53 = vld [vmem:[#allocation2 + $0x320] ss:$16 sps:$4 sm:$0xff]  }
  0x46   :  { %v3796_v52 = vld [vmem:[#allocation2 + $0x2ec] ss:$16 sps:$4 sm:$0xff]   ;;  %v3799_v55 = vld [vmem:[#allocation2 + $0x344] ss:$16 sps:$4 sm:$0xff]  }
  0x47   :  { %1325 = vmatpush1.bf16.msra.mxu0 %v3694_v39  ;;  %v3776_v39 = vld [vmem:[#allocation2 + $0x288] ss:$16 sps:$4 sm:$0xff]   ;;  %v3823_v8 = vld [vmem:[#allocation2 + $0x3c4] ss:$16 sps:$4 sm:$0xff]   ;;  %v3826_v9 = vld [vmem:[#allocation2 + $0x38c] ss:$16 sps:$4 sm:$0xff]  }
  0x48   :  { %1493 = vmatpush1.bf16.msra.mxu1 %v3691_v38  ;;  %1326 = vmatprep.subr.bf16.mxu0 %v3695_v40  ;;  %v3773_v38 = vld [vmem:[#allocation2 + $0x2c0] ss:$16 sps:$4 sm:$0xff]   ;;  %v64_v40 = vld [vmem:[%s4534_s0 + $0x18] sm:$0xff] }
  0x49   :  { %1494 = vmatprep.subr.bf16.mxu1 %v3699_v41  ;;  %v71_v41 = vld [vmem:[%s4534_s0 + $0x50] sm:$0xff] }
  0x4b   :  { %1327 = vmatpush1.bf16.msra.mxu0 %v3700_v43  ;;  %v78_v43 = vpack.c.bf16 %v71_v41, %v64_v40  ;;  %v3862_v40 = vld [vmem:[#allocation2 + $0x44c] ss:$16 sps:$4 sm:$0xff]   ;;  %v3857_v41 = vld [vmem:[#allocation2 + $0x480] ss:$16 sps:$4 sm:$0xff]  }
  0x4c   :  { %1495 = vmatpush1.bf16.msra.mxu1 %v3697_v42  ;;  %1328 = vmatprep.subr.bf16.mxu0 %v3701_v44  ;;  %v3781_v42 = vld [vmem:[#allocation2 + $0x2e4] ss:$16 sps:$4 sm:$0xff]   ;;  %v3784_v44 = vld [vmem:[#allocation2 + $0x2ac] ss:$16 sps:$4 sm:$0xff]  }
  0x4d   :  { %1496 = vmatprep.subr.bf16.mxu1 %v3705_v45  ;;  %v3779_v45 = vld [vmem:[#allocation2 + $0x2e0] ss:$16 sps:$4 sm:$0xff]  }
  0x4f   :  { %1329 = vmatpush1.bf16.msra.mxu0 %v3706_v47  ;;  %v3787_v47 = vld [vmem:[#allocation2 + $0x304] ss:$16 sps:$4 sm:$0xff]  }
  0x50   :  { %1497 = vmatpush1.bf16.msra.mxu1 %v3703_v46  ;;  %1330 = vmatprep.subr.bf16.mxu0 %v3707_v48  ;;  %v3782_v46 = vld [vmem:[#allocation2 + $0x2a8] ss:$16 sps:$4 sm:$0xff]   ;;  %v3790_v48 = vld [vmem:[#allocation2 + $0x2cc] ss:$16 sps:$4 sm:$0xff]  }
  0x51   :  { %1498 = vmatprep.subr.bf16.mxu1 %v3711_v49  ;;  %v3785_v49 = vld [vmem:[#allocation2 + $0x300] ss:$16 sps:$4 sm:$0xff]  }
  0x53   :  { %1331 = vmatpush1.bf16.msra.mxu0 %v3712_v51  ;;  %v3793_v51 = vld [vmem:[#allocation2 + $0x324] ss:$16 sps:$4 sm:$0xff]  }
  0x54   :  { %1499 = vmatpush1.bf16.msra.mxu1 %v3709_v50  ;;  %1332 = vmatprep.subr.bf16.mxu0 %v3713_v54  ;;  %v3788_v50 = vld [vmem:[#allocation2 + $0x2c8] ss:$16 sps:$4 sm:$0xff]  }
  0x55   :  { %1500 = vmatprep.subr.bf16.mxu1 %v3717_v56  ;;  %v3794_v54 = vld [vmem:[#allocation2 + $0x2e8] ss:$16 sps:$4 sm:$0xff]   ;;  %v3802_v56 = vld [vmem:[#allocation2 + $0x30c] ss:$16 sps:$4 sm:$0xff]  }
  0x57   :  { %1333 = vmatpush1.bf16.msra.mxu0 %v3718_v58  ;;  %v3800_v58 = vld [vmem:[#allocation2 + $0x308] ss:$16 sps:$4 sm:$0xff]  }
  0x58   :  { %1501 = vmatpush1.bf16.msra.mxu1 %v3715_v57  ;;  %1334 = vmatprep.subr.bf16.mxu0 %v3719_v59  ;;  %v3797_v57 = vld [vmem:[#allocation2 + $0x340] ss:$16 sps:$4 sm:$0xff]   ;;  %v3805_v59 = vld [vmem:[#allocation2 + $0x364] ss:$16 sps:$4 sm:$0xff]  }
  0x59   :  { %1502 = vmatprep.subr.bf16.mxu1 %v3723_v60  ;;  %v3808_v60 = vld [vmem:[#allocation2 + $0x32c] ss:$16 sps:$4 sm:$0xff]  }
  0x5b   :  { %1335 = vmatpush1.bf16.msra.mxu0 %v3724_v62  ;;  %v3806_v62 = vld [vmem:[#allocation2 + $0x328] ss:$16 sps:$4 sm:$0xff]  }
  0x5c   :  { %1503 = vmatpush1.bf16.msra.mxu1 %v3721_v61  ;;  %1336 = vmatprep.subr.bf16.mxu0 %v3725_v63  ;;  %v3803_v61 = vld [vmem:[#allocation2 + $0x360] ss:$16 sps:$4 sm:$0xff]   ;;  %v3811_v63 = vld [vmem:[#allocation2 + $0x384] ss:$16 sps:$4 sm:$0xff]  }
  0x5d   :  { %1504 = vmatprep.subr.bf16.mxu1 %v3729_v1  ;;  %v3814_v1 = vld [vmem:[#allocation2 + $0x34c] ss:$16 sps:$4 sm:$0xff]  }
  0x5f   :  { %1337 = vmatpush1.bf16.msra.mxu0 %v3730_v3  ;;  %v3812_v3 = vld [vmem:[#allocation2 + $0x348] ss:$16 sps:$4 sm:$0xff]  }
  0x60   :  { %1505 = vmatpush1.bf16.msra.mxu1 %v3727_v2  ;;  %1338 = vmatprep.subr.bf16.mxu0 %v3731_v4  ;;  %v3809_v2 = vld [vmem:[#allocation2 + $0x380] ss:$16 sps:$4 sm:$0xff]   ;;  %v3817_v4 = vld [vmem:[#allocation2 + $0x3a4] ss:$16 sps:$4 sm:$0xff]  }
  0x61   :  { %1506 = vmatprep.subr.bf16.mxu1 %v3735_v5  ;;  %v3820_v5 = vld [vmem:[#allocation2 + $0x36c] ss:$16 sps:$4 sm:$0xff]  }
  0x63   :  { %1339 = vmatpush1.bf16.msra.mxu0 %v3736_v7  ;;  %v3818_v7 = vld [vmem:[#allocation2 + $0x368] ss:$16 sps:$4 sm:$0xff]  }
  0x64   :  { %1507 = vmatpush1.bf16.msra.mxu1 %v3733_v6  ;;  %1351 = vmatprep.subr.bf16.mxu0 %v3739_v10  ;;  %v3815_v6 = vld [vmem:[#allocation2 + $0x3a0] ss:$16 sps:$4 sm:$0xff]  }
  0x65   :  { %1508 = vmatprep.subr.bf16.mxu1 %v3742_v11  ;;  %v3821_v10 = vld [vmem:[#allocation2 + $0x3c0] ss:$16 sps:$4 sm:$0xff]   ;;  %v3824_v11 = vld [vmem:[#allocation2 + $0x388] ss:$16 sps:$4 sm:$0xff]  }
  0x66   :  { %1341 = vmatmul.mubr.bf16.vlgmr.msra.gmra.mrb[0].mxu0 %v75_v12 }
  0x67   :  { %1352 = vmatpush1.bf16.msra.mxu0 %v3737_v13  ;;  %1383 = vmatprep.mubr.bf16.mxu0 %v78_v43  ;;  %v3832_v13 = vld [vmem:[#allocation2 + $0x3ac] ss:$16 sps:$4 sm:$0xff]  }
  0x68   :  { %1509 = vmatpush1.bf16.msra.mxu1 %v3740_v14  ;;  %1353 = vmatprep.subr.bf16.mxu0 %v3745_v16  ;;  %v3827_v14 = vld [vmem:[#allocation2 + $0x3e0] ss:$16 sps:$4 sm:$0xff]   ;;  %v3830_v16 = vld [vmem:[#allocation2 + $0x3a8] ss:$16 sps:$4 sm:$0xff]  }
  0x69   :  { %1510 = vmatprep.subr.bf16.mxu1 %v3748_v17  ;;  %v63_v17 = vld [vmem:[%s4534_s0 + $0x10] sm:$0xff] }
  0x6b   :  { %1354 = vmatpush1.bf16.msra.mxu0 %v3743_v18  ;;  %v70_v18 = vld [vmem:[%s4534_s0 + $0x48] sm:$0xff] }
  0x6c   :  { %1511 = vmatpush1.bf16.msra.mxu1 %v3746_v19  ;;  %1355 = vmatprep.subr.bf16.mxu0 %v3751_v20  ;;  %v3835_v19 = vld [vmem:[#allocation2 + $0x404] ss:$16 sps:$4 sm:$0xff]   ;;  %v3838_v20 = vld [vmem:[#allocation2 + $0x3cc] ss:$16 sps:$4 sm:$0xff]  }
  0x6d   :  { %1523 = vmatprep.subr.bf16.mxu1 %v3754_v21  ;;  %v77_v21 = vpack.c.bf16 %v70_v18, %v63_v17  ;;  %v3919_v17 = vld [vmem:[#allocation2 + $0x5c4] ss:$16 sps:$4 sm:$0xff]   ;;  %v3922_v18 = vld [vmem:[#allocation2 + $0x58c] ss:$16 sps:$4 sm:$0xff]  }
  0x6f   :  { %1513 = vmatmul.mubr.bf16.vlgmr.msra.gmra.mrb[4].mxu1 %v75_v12  ;;  %1356 = vmatpush1.bf16.msra.mxu0 %v3749_v22  ;;  %v3829_v12 = vld [vmem:[#allocation2 + $0x3e4] ss:$16 sps:$4 sm:$0xff]   ;;  %v3833_v22 = vld [vmem:[#allocation2 + $0x400] ss:$16 sps:$4 sm:$0xff]  }
  0x70   :  { %1524 = vmatpush1.bf16.msra.mxu1 %v3752_v23  ;;  %1357 = vmatprep.subr.bf16.mxu0 %v3757_v24  ;;  %v3836_v23 = vld [vmem:[#allocation2 + $0x3c8] ss:$16 sps:$4 sm:$0xff]   ;;  %v3841_v24 = vld [vmem:[#allocation2 + $0x424] ss:$16 sps:$4 sm:$0xff]  }
  0x71   :  { %1525 = vmatprep.subr.bf16.mxu1 %v3760_v25  ;;  %1555 = vmatprep.mubr.bf16.mxu1 %v78_v43  ;;  %v3844_v25 = vld [vmem:[#allocation2 + $0x3ec] ss:$16 sps:$4 sm:$0xff]   ;;  %v3865_v43 = vld [vmem:[#allocation2 + $0x4a4] ss:$16 sps:$4 sm:$0xff]  }
  0x73   :  { %1358 = vmatpush1.bf16.msra.mxu0 %v3755_v26  ;;  %v66_v26 = vld [vmem:[%s4534_s0 + $0x28] sm:$0xff] }
  0x74   :  { %1526 = vmatpush1.bf16.msra.mxu1 %v3758_v27  ;;  %1359 = vmatprep.subr.bf16.mxu0 %v3763_v28  ;;  %v73_v27 = vld [vmem:[%s4534_s0 + $0x60] sm:$0xff] }
  0x75   :  { %1527 = vmatprep.subr.bf16.mxu1 %v3766_v29  ;;  %v3839_v28 = vld [vmem:[#allocation2 + $0x420] ss:$16 sps:$4 sm:$0xff]   ;;  %v3842_v29 = vld [vmem:[#allocation2 + $0x3e8] ss:$16 sps:$4 sm:$0xff]  }
  0x77   :  { %1360 = vmatpush1.bf16.msra.mxu0 %v3761_v30  ;;  %v80_v30 = vpack.c.bf16 %v73_v27, %v66_v26  ;;  %v72_v26 = vld [vmem:[%s4534_s0 + $0x58] sm:$0xff] }
  0x78   :  { %1528 = vmatpush1.bf16.msra.mxu1 %v3764_v31  ;;  %1361 = vmatprep.subr.bf16.mxu0 %v3769_v32  ;;  %v3847_v31 = vld [vmem:[#allocation2 + $0x444] ss:$16 sps:$4 sm:$0xff]   ;;  %v3850_v32 = vld [vmem:[#allocation2 + $0x40c] ss:$16 sps:$4 sm:$0xff]  }
  0x79   :  { %1529 = vmatprep.subr.bf16.mxu1 %v3772_v33  ;;  %v3845_v33 = vld [vmem:[#allocation2 + $0x440] ss:$16 sps:$4 sm:$0xff]   ;;  %v3931_v27 = vld [vmem:[#allocation2 + $0x5cc] ss:$16 sps:$4 sm:$0xff]  }
  0x7b   :  { %1362 = vmatpush1.bf16.msra.mxu0 %v3767_v34  ;;  %v3848_v34 = vld [vmem:[#allocation2 + $0x408] ss:$16 sps:$4 sm:$0xff]  }
  0x7c   :  { %1530 = vmatpush1.bf16.msra.mxu1 %v3770_v35  ;;  %1363 = vmatprep.subr.bf16.mxu0 %v3775_v36  ;;  %v3853_v35 = vld [vmem:[#allocation2 + $0x464] ss:$16 sps:$4 sm:$0xff]   ;;  %v3856_v36 = vld [vmem:[#allocation2 + $0x42c] ss:$16 sps:$4 sm:$0xff]  }
  0x7d   :  { %1531 = vmatprep.subr.bf16.mxu1 %v3778_v37  ;;  %v3851_v37 = vld [vmem:[#allocation2 + $0x460] ss:$16 sps:$4 sm:$0xff]  }
  0x7f   :  { %1364 = vmatpush1.bf16.msra.mxu0 %v3773_v38  ;;  %v3854_v38 = vld [vmem:[#allocation2 + $0x428] ss:$16 sps:$4 sm:$0xff]  }
  0x80   :  { %1532 = vmatpush1.bf16.msra.mxu1 %v3776_v39  ;;  %1365 = vmatprep.subr.bf16.mxu0 %v3781_v42  ;;  %v3859_v39 = vld [vmem:[#allocation2 + $0x484] ss:$16 sps:$4 sm:$0xff]   ;;  %v3860_v42 = vld [vmem:[#allocation2 + $0x448] ss:$16 sps:$4 sm:$0xff]  }
  0x81   :  { %1533 = vmatprep.subr.bf16.mxu1 %v3784_v44  ;;  %v3868_v44 = vld [vmem:[#allocation2 + $0x46c] ss:$16 sps:$4 sm:$0xff]  }
  0x83   :  { %1366 = vmatpush1.bf16.msra.mxu0 %v3779_v45  ;;  %v3863_v45 = vld [vmem:[#allocation2 + $0x4a0] ss:$16 sps:$4 sm:$0xff]  }
  0x84   :  { %1534 = vmatpush1.bf16.msra.mxu1 %v3782_v46  ;;  %1367 = vmatprep.subr.bf16.mxu0 %v3787_v47  ;;  %v3866_v46 = vld [vmem:[#allocation2 + $0x468] ss:$16 sps:$4 sm:$0xff]   ;;  %v3871_v47 = vld [vmem:[#allocation2 + $0x4c4] ss:$16 sps:$4 sm:$0xff]  }
  0x85   :  { %1535 = vmatprep.subr.bf16.mxu1 %v3790_v48  ;;  %v3874_v48 = vld [vmem:[#allocation2 + $0x48c] ss:$16 sps:$4 sm:$0xff]  }
  0x87   :  { %1368 = vmatpush1.bf16.msra.mxu0 %v3785_v49  ;;  %v3869_v49 = vld [vmem:[#allocation2 + $0x4c0] ss:$16 sps:$4 sm:$0xff]  }
  0x88   :  { %1536 = vmatpush1.bf16.msra.mxu1 %v3788_v50  ;;  %1369 = vmatprep.subr.bf16.mxu0 %v3793_v51  ;;  %v3872_v50 = vld [vmem:[#allocation2 + $0x488] ss:$16 sps:$4 sm:$0xff]   ;;  %v3877_v51 = vld [vmem:[#allocation2 + $0x4e4] ss:$16 sps:$4 sm:$0xff]  }
  0x89   :  { %1537 = vmatprep.subr.bf16.mxu1 %v3796_v52  ;;  %v3880_v52 = vld [vmem:[#allocation2 + $0x4ac] ss:$16 sps:$4 sm:$0xff]  }
  0x8b   :  { %1370 = vmatpush1.bf16.msra.mxu0 %v3791_v53  ;;  %v3875_v53 = vld [vmem:[#allocation2 + $0x4e0] ss:$16 sps:$4 sm:$0xff]  }
  0x8c   :  { %1538 = vmatpush1.bf16.msra.mxu1 %v3794_v54  ;;  %1371 = vmatprep.subr.bf16.mxu0 %v3799_v55  ;;  %v3878_v54 = vld [vmem:[#allocation2 + $0x4a8] ss:$16 sps:$4 sm:$0xff]   ;;  %v3883_v55 = vld [vmem:[#allocation2 + $0x504] ss:$16 sps:$4 sm:$0xff]  }
  0x8d   :  { %1539 = vmatprep.subr.bf16.mxu1 %v3802_v56  ;;  %v3886_v56 = vld [vmem:[#allocation2 + $0x4cc] ss:$16 sps:$4 sm:$0xff]  }
  0x8f   :  { %1372 = vmatpush1.bf16.msra.mxu0 %v3797_v57  ;;  %v3881_v57 = vld [vmem:[#allocation2 + $0x500] ss:$16 sps:$4 sm:$0xff]  }
  0x90   :  { %1540 = vmatpush1.bf16.msra.mxu1 %v3800_v58  ;;  %1373 = vmatprep.subr.bf16.mxu0 %v3805_v59  ;;  %v3884_v58 = vld [vmem:[#allocation2 + $0x4c8] ss:$16 sps:$4 sm:$0xff]   ;;  %v3889_v59 = vld [vmem:[#allocation2 + $0x524] ss:$16 sps:$4 sm:$0xff]  }
  0x91   :  { %1541 = vmatprep.subr.bf16.mxu1 %v3808_v60  ;;  %v3892_v60 = vld [vmem:[#allocation2 + $0x4ec] ss:$16 sps:$4 sm:$0xff]  }
  0x93   :  { %1374 = vmatpush1.bf16.msra.mxu0 %v3803_v61  ;;  %v3887_v61 = vld [vmem:[#allocation2 + $0x520] ss:$16 sps:$4 sm:$0xff]  }
  0x94   :  { %1542 = vmatpush1.bf16.msra.mxu1 %v3806_v62  ;;  %1375 = vmatprep.subr.bf16.mxu0 %v3811_v63  ;;  %v3890_v62 = vld [vmem:[#allocation2 + $0x4e8] ss:$16 sps:$4 sm:$0xff]   ;;  %v3895_v63 = vld [vmem:[#allocation2 + $0x544] ss:$16 sps:$4 sm:$0xff]  }
  0x95   :  { %1543 = vmatprep.subr.bf16.mxu1 %v3814_v1  ;;  %v3898_v1 = vld [vmem:[#allocation2 + $0x50c] ss:$16 sps:$4 sm:$0xff]  }
  0x97   :  { %1376 = vmatpush1.bf16.msra.mxu0 %v3809_v2  ;;  %v3893_v2 = vld [vmem:[#allocation2 + $0x540] ss:$16 sps:$4 sm:$0xff]  }
  0x98   :  { %1544 = vmatpush1.bf16.msra.mxu1 %v3812_v3  ;;  %1377 = vmatprep.subr.bf16.mxu0 %v3817_v4  ;;  %v3896_v3 = vld [vmem:[#allocation2 + $0x508] ss:$16 sps:$4 sm:$0xff]   ;;  %v3901_v4 = vld [vmem:[#allocation2 + $0x564] ss:$16 sps:$4 sm:$0xff]  }
  0x99   :  { %1545 = vmatprep.subr.bf16.mxu1 %v3820_v5  ;;  %v3904_v5 = vld [vmem:[#allocation2 + $0x52c] ss:$16 sps:$4 sm:$0xff]  }
  0x9b   :  { %1378 = vmatpush1.bf16.msra.mxu0 %v3815_v6  ;;  %v3899_v6 = vld [vmem:[#allocation2 + $0x560] ss:$16 sps:$4 sm:$0xff]  }
  0x9c   :  { %1546 = vmatpush1.bf16.msra.mxu1 %v3818_v7  ;;  %1379 = vmatprep.subr.bf16.mxu0 %v3823_v8  ;;  %v3902_v7 = vld [vmem:[#allocation2 + $0x528] ss:$16 sps:$4 sm:$0xff]   ;;  %v3907_v8 = vld [vmem:[#allocation2 + $0x584] ss:$16 sps:$4 sm:$0xff]  }
  0x9d   :  { %1547 = vmatprep.subr.bf16.mxu1 %v3826_v9  ;;  %v3910_v9 = vld [vmem:[#allocation2 + $0x54c] ss:$16 sps:$4 sm:$0xff]  }
  0x9f   :  { %1380 = vmatpush1.bf16.msra.mxu0 %v3821_v10  ;;  %v3905_v10 = vld [vmem:[#allocation2 + $0x580] ss:$16 sps:$4 sm:$0xff]  }
  0xa0   :  { %1548 = vmatpush1.bf16.msra.mxu1 %v3824_v11  ;;  %1381 = vmatprep.subr.bf16.mxu0 %v3829_v12  ;;  %v3908_v11 = vld [vmem:[#allocation2 + $0x548] ss:$16 sps:$4 sm:$0xff]   ;;  %v3913_v12 = vld [vmem:[#allocation2 + $0x5a4] ss:$16 sps:$4 sm:$0xff]  }
  0xa1   :  { %1549 = vmatprep.subr.bf16.mxu1 %v3832_v13  ;;  %v3916_v13 = vld [vmem:[#allocation2 + $0x56c] ss:$16 sps:$4 sm:$0xff]  }
  0xa3   :  { %1382 = vmatpush1.bf16.msra.mxu0 %v3827_v14  ;;  %v3911_v14 = vld [vmem:[#allocation2 + $0x5a0] ss:$16 sps:$4 sm:$0xff]  }
  0xa4   :  { %1550 = vmatpush1.bf16.msra.mxu1 %v3830_v16  ;;  %1394 = vmatprep.subr.bf16.mxu0 %v3835_v19  ;;  %v3914_v16 = vld [vmem:[#allocation2 + $0x568] ss:$16 sps:$4 sm:$0xff]   ;;  %v3917_v19 = vld [vmem:[#allocation2 + $0x5c0] ss:$16 sps:$4 sm:$0xff]  }
  0xa5   :  { %1551 = vmatprep.subr.bf16.mxu1 %v3838_v20  ;;  %v3920_v20 = vld [vmem:[#allocation2 + $0x588] ss:$16 sps:$4 sm:$0xff]  }
  0xa6   :  { %1384 = vmatmul.mubr.bf16.vlgmr.msra.gmra.mrb[0].mxu0 %v77_v21 }
  0xa7   :  { %1395 = vmatpush1.bf16.msra.mxu0 %v3833_v22  ;;  %1426 = vmatprep.mubr.bf16.mxu0 %v80_v30  ;;  %v3928_v22 = vld [vmem:[#allocation2 + $0x5ac] ss:$16 sps:$4 sm:$0xff]  }
  0xa8   :  { %1552 = vmatpush1.bf16.msra.mxu1 %v3836_v23  ;;  %1396 = vmatprep.subr.bf16.mxu0 %v3841_v24  ;;  %v3923_v23 = vld [vmem:[#allocation2 + $0x5e0] ss:$16 sps:$4 sm:$0xff]   ;;  %v3926_v24 = vld [vmem:[#allocation2 + $0x5a8] ss:$16 sps:$4 sm:$0xff]  }
  0xa9   :  { %1553 = vmatprep.subr.bf16.mxu1 %v3844_v25  ;;  %v65_v25 = vld [vmem:[%s4534_s0 + $0x20] sm:$0xff] }
  0xab   :  { %1397 = vmatpush1.bf16.msra.mxu0 %v3839_v28  ;;  %v3943_v28 = vld [vmem:[#allocation4 + $0x4] ss:$16 sps:$4 sm:$0xff]  }
  0xac   :  { %1554 = vmatpush1.bf16.msra.mxu1 %v3842_v29  ;;  %1398 = vmatprep.subr.bf16.mxu0 %v3847_v31  ;;  %v3929_v29 = vld [vmem:[#allocation2 + $0x5c8] ss:$16 sps:$4 sm:$0xff]   ;;  %v79_v31 = vpack.c.bf16 %v72_v26, %v65_v25  ;;  %v4018_v26 = vld [vmem:[#allocation4 + $0x18c] ss:$16 sps:$4 sm:$0xff]  }
  0xad   :  { %1566 = vmatprep.subr.bf16.mxu1 %v3850_v32  ;;  %v3934_v32 = vld [vmem:[#allocation2 + $0x5ec] ss:$16 sps:$4 sm:$0xff]   ;;  %v4010_v25 = vld [vmem:[#allocation4 + $0x168] ss:$16 sps:$4 sm:$0xff]  }
  0xaf   :  { %1556 = vmatmul.mubr.bf16.vlgmr.msra.gmra.mrb[4].mxu1 %v77_v21  ;;  %1399 = vmatpush1.bf16.msra.mxu0 %v3845_v33  ;;  %v3925_v21 = vld [vmem:[#allocation2 + $0x5e4] ss:$16 sps:$4 sm:$0xff]  }
  0xb0   :  { %1567 = vmatpush1.bf16.msra.mxu1 %v3848_v34  ;;  %1400 = vmatprep.subr.bf16.mxu0 %v3853_v35  ;;  %v3949_v33 = vld [vmem:[#allocation4 + $0x24] ss:$16 sps:$4 sm:$0xff]   ;;  %v3932_v34 = vld [vmem:[#allocation2 + $0x5e8] ss:$16 sps:$4 sm:$0xff]   ;;  %v3947_v35 = vld [vmem:[#allocation4 + $0x20] ss:$16 sps:$4 sm:$0xff]  }
  0xb1   :  { %1568 = vmatprep.subr.bf16.mxu1 %v3856_v36  ;;  %1598 = vmatprep.mubr.bf16.mxu1 %v80_v30  ;;  %v3941_v30 = vld [vmem:[#allocation4] ss:$16 sps:$4 sm:$0xff]   ;;  %v3937_v36 = vld [vmem:[#allocation2 + $0x60c] ss:$16 sps:$4 sm:$0xff]  }
  0xb3   :  { %1401 = vmatpush1.bf16.msra.mxu0 %v3851_v37  ;;  %v3955_v37 = vld [vmem:[#allocation4 + $0x44] ss:$16 sps:$4 sm:$0xff]  }
  0xb4   :  { %1569 = vmatpush1.bf16.msra.mxu1 %v3854_v38  ;;  %1402 = vmatprep.subr.bf16.mxu0 %v3859_v39  ;;  %v3935_v38 = vld [vmem:[#allocation2 + $0x608] ss:$16 sps:$4 sm:$0xff]   ;;  %v3940_v39 = vld [vmem:[#allocation2 + $0x62c] ss:$16 sps:$4 sm:$0xff]  }
  0xb5   :  { %1570 = vmatprep.subr.bf16.mxu1 %v3862_v40  ;;  %v3953_v40 = vld [vmem:[#allocation4 + $0x40] ss:$16 sps:$4 sm:$0xff]  }
  0xb7   :  { %1403 = vmatpush1.bf16.msra.mxu0 %v3857_v41  ;;  %v3961_v41 = vld [vmem:[#allocation4 + $0x64] ss:$16 sps:$4 sm:$0xff]  }
  0xb8   :  { %1571 = vmatpush1.bf16.msra.mxu1 %v3860_v42  ;;  %1404 = vmatprep.subr.bf16.mxu0 %v3865_v43  ;;  %v3938_v42 = vld [vmem:[#allocation2 + $0x628] ss:$16 sps:$4 sm:$0xff]   ;;  %v3946_v43 = vld [vmem:[#allocation4 + $0xc] ss:$16 sps:$4 sm:$0xff]  }
  0xb9   :  { %1572 = vmatprep.subr.bf16.mxu1 %v3868_v44  ;;  %v3959_v44 = vld [vmem:[#allocation4 + $0x60] ss:$16 sps:$4 sm:$0xff]  }
  0xbb   :  { %1405 = vmatpush1.bf16.msra.mxu0 %v3863_v45  ;;  %v3967_v45 = vld [vmem:[#allocation4 + $0x84] ss:$16 sps:$4 sm:$0xff]  }
  0xbc   :  { %1573 = vmatpush1.bf16.msra.mxu1 %v3866_v46  ;;  %1406 = vmatprep.subr.bf16.mxu0 %v3871_v47  ;;  %v3965_v46 = vld [vmem:[#allocation4 + $0x80] ss:$16 sps:$4 sm:$0xff]   ;;  %v3973_v47 = vld [vmem:[#allocation4 + $0xa4] ss:$16 sps:$4 sm:$0xff]  }
  0xbd   :  { %1574 = vmatprep.subr.bf16.mxu1 %v3874_v48  ;;  %v3944_v48 = vld [vmem:[#allocation4 + $0x8] ss:$16 sps:$4 sm:$0xff]  }
  0xbf   :  { %1407 = vmatpush1.bf16.msra.mxu0 %v3869_v49  ;;  %v3952_v49 = vld [vmem:[#allocation4 + $0x2c] ss:$16 sps:$4 sm:$0xff]  }
  0xc0   :  { %1575 = vmatpush1.bf16.msra.mxu1 %v3872_v50  ;;  %1408 = vmatprep.subr.bf16.mxu0 %v3877_v51  ;;  %v3971_v50 = vld [vmem:[#allocation4 + $0xa0] ss:$16 sps:$4 sm:$0xff]   ;;  %v3979_v51 = vld [vmem:[#allocation4 + $0xc4] ss:$16 sps:$4 sm:$0xff]  }
  0xc1   :  { %1576 = vmatprep.subr.bf16.mxu1 %v3880_v52  ;;  %v3950_v52 = vld [vmem:[#allocation4 + $0x28] ss:$16 sps:$4 sm:$0xff]  }
  0xc3   :  { %1409 = vmatpush1.bf16.msra.mxu0 %v3875_v53  ;;  %v3977_v53 = vld [vmem:[#allocation4 + $0xc0] ss:$16 sps:$4 sm:$0xff]  }
  0xc4   :  { %1577 = vmatpush1.bf16.msra.mxu1 %v3878_v54  ;;  %1410 = vmatprep.subr.bf16.mxu0 %v3883_v55  ;;  %v3985_v54 = vld [vmem:[#allocation4 + $0xe4] ss:$16 sps:$4 sm:$0xff]   ;;  %v3956_v55 = vld [vmem:[#allocation4 + $0x48] ss:$16 sps:$4 sm:$0xff]  }
  0xc5   :  { %1578 = vmatprep.subr.bf16.mxu1 %v3886_v56  ;;  %v3964_v56 = vld [vmem:[#allocation4 + $0x6c] ss:$16 sps:$4 sm:$0xff]  }
  0xc7   :  { %1411 = vmatpush1.bf16.msra.mxu0 %v3881_v57  ;;  %v3983_v57 = vld [vmem:[#allocation4 + $0xe0] ss:$16 sps:$4 sm:$0xff]  }
  0xc8   :  { %1579 = vmatpush1.bf16.msra.mxu1 %v3884_v58  ;;  %1412 = vmatprep.subr.bf16.mxu0 %v3889_v59  ;;  %v3991_v58 = vld [vmem:[#allocation4 + $0x104] ss:$16 sps:$4 sm:$0xff]  }
  0xc9   :  { %1580 = vmatprep.subr.bf16.mxu1 %v3892_v60  ;;  %v3962_v60 = vld [vmem:[#allocation4 + $0x68] ss:$16 sps:$4 sm:$0xff]  }
  0xcb   :  { %1413 = vmatpush1.bf16.msra.mxu0 %v3887_v61 }
  0xcc   :  { %1581 = vmatpush1.bf16.msra.mxu1 %v3890_v62  ;;  %1414 = vmatprep.subr.bf16.mxu0 %v3895_v63  ;;  %v3989_v62 = vld [vmem:[#allocation4 + $0x100] ss:$16 sps:$4 sm:$0xff]  }
  0xcd   :  { %1582 = vmatprep.subr.bf16.mxu1 %v3898_v1 }
  0xcf   :  { %1415 = vmatpush1.bf16.msra.mxu0 %v3893_v2  ;;  %v3997_v2 = vld [vmem:[#allocation4 + $0x124] ss:$16 sps:$4 sm:$0xff]  }
  0xd0   :  { %1583 = vmatpush1.bf16.msra.mxu1 %v3896_v3  ;;  %1416 = vmatprep.subr.bf16.mxu0 %v3901_v4  ;;  %v3968_v3 = vld [vmem:[#allocation4 + $0x88] ss:$16 sps:$4 sm:$0xff]   ;;  %v3976_v4 = vld [vmem:[#allocation4 + $0xac] ss:$16 sps:$4 sm:$0xff]  }
  0xd1   :  { %1584 = vmatprep.subr.bf16.mxu1 %v3904_v5  ;;  %v3995_v5 = vld [vmem:[#allocation4 + $0x120] ss:$16 sps:$4 sm:$0xff]  }
  0xd3   :  { %1417 = vmatpush1.bf16.msra.mxu0 %v3899_v6  ;;  %v4003_v6 = vld [vmem:[#allocation4 + $0x144] ss:$16 sps:$4 sm:$0xff]  }
  0xd4   :  { %1585 = vmatpush1.bf16.msra.mxu1 %v3902_v7  ;;  %1418 = vmatprep.subr.bf16.mxu0 %v3907_v8  ;;  %v3974_v7 = vld [vmem:[#allocation4 + $0xa8] ss:$16 sps:$4 sm:$0xff]   ;;  %v3982_v8 = vld [vmem:[#allocation4 + $0xcc] ss:$16 sps:$4 sm:$0xff]  }
  0xd5   :  { %1586 = vmatprep.subr.bf16.mxu1 %v3910_v9  ;;  %v4001_v9 = vld [vmem:[#allocation4 + $0x140] ss:$16 sps:$4 sm:$0xff]  }
  0xd7   :  { %1419 = vmatpush1.bf16.msra.mxu0 %v3905_v10  ;;  %v4009_v10 = vld [vmem:[#allocation4 + $0x164] ss:$16 sps:$4 sm:$0xff]  }
  0xd8   :  { %1587 = vmatpush1.bf16.msra.mxu1 %v3908_v11  ;;  %1420 = vmatprep.subr.bf16.mxu0 %v3913_v12  ;;  %v3980_v11 = vld [vmem:[#allocation4 + $0xc8] ss:$16 sps:$4 sm:$0xff]   ;;  %v3988_v12 = vld [vmem:[#allocation4 + $0xec] ss:$16 sps:$4 sm:$0xff]  }
  0xd9   :  { %1588 = vmatprep.subr.bf16.mxu1 %v3916_v13  ;;  %v4007_v13 = vld [vmem:[#allocation4 + $0x160] ss:$16 sps:$4 sm:$0xff]  }
  0xdb   :  { %1421 = vmatpush1.bf16.msra.mxu0 %v3911_v14  ;;  %v4015_v14 = vld [vmem:[#allocation4 + $0x184] ss:$16 sps:$4 sm:$0xff]  }
  0xdc   :  { %1589 = vmatpush1.bf16.msra.mxu1 %v3914_v16  ;;  %1422 = vmatprep.subr.bf16.mxu0 %v3919_v17  ;;  %v3986_v16 = vld [vmem:[#allocation4 + $0xe8] ss:$16 sps:$4 sm:$0xff]   ;;  %v3994_v17 = vld [vmem:[#allocation4 + $0x10c] ss:$16 sps:$4 sm:$0xff]  }
  0xdd   :  { %1590 = vmatprep.subr.bf16.mxu1 %v3922_v18  ;;  %v4013_v18 = vld [vmem:[#allocation4 + $0x180] ss:$16 sps:$4 sm:$0xff]  }
  0xdf   :  { %1423 = vmatpush1.bf16.msra.mxu0 %v3917_v19  ;;  %v3992_v19 = vld [vmem:[#allocation4 + $0x108] ss:$16 sps:$4 sm:$0xff]  }
  0xe0   :  { %1591 = vmatpush1.bf16.msra.mxu1 %v3920_v20  ;;  %1424 = vmatprep.subr.bf16.mxu0 %v3925_v21  ;;  %v4000_v20 = vld [vmem:[#allocation4 + $0x12c] ss:$16 sps:$4 sm:$0xff]   ;;  %v3998_v21 = vld [vmem:[#allocation4 + $0x128] ss:$16 sps:$4 sm:$0xff]  }
  0xe1   :  { %1592 = vmatprep.subr.bf16.mxu1 %v3928_v22  ;;  %v4006_v22 = vld [vmem:[#allocation4 + $0x14c] ss:$16 sps:$4 sm:$0xff]  }
  0xe3   :  { %1425 = vmatpush1.bf16.msra.mxu0 %v3923_v23  ;;  %v4004_v23 = vld [vmem:[#allocation4 + $0x148] ss:$16 sps:$4 sm:$0xff]  }
  0xe4   :  { %1593 = vmatpush1.bf16.msra.mxu1 %v3926_v24  ;;  %2462 = vmatprep.subr.bf16.mxu0 %v3943_v28  ;;  %v4012_v24 = vld [vmem:[#allocation4 + $0x16c] ss:$16 sps:$4 sm:$0xff]   ;;  %v4021_v28 = vld [vmem:[#allocation4 + $0x1a4] ss:$16 sps:$4 sm:$0xff]  }
  0xe5   :  { %1594 = vmatprep.subr.bf16.mxu1 %v3931_v27  ;;  %v4016_v27 = vld [vmem:[#allocation4 + $0x188] ss:$16 sps:$4 sm:$0xff]  }
  0xe6   :  { %1427 = vmatmul.mubr.bf16.vlgmr.msra.gmra.mrb[0].mxu0 %v79_v31 }
  0xe7   :  { %2463 = vmatpush1.bf16.msra.mxu0 %v3941_v30  ;;  %v4019_v30 = vld [vmem:[#allocation4 + $0x1a0] ss:$16 sps:$4 sm:$0xff]  }
  0xe8   :  { %1595 = vmatpush1.bf16.msra.mxu1 %v3929_v29  ;;  %2464 = vmatprep.subr.bf16.mxu0 %v3949_v33  ;;  %v4024_v29 = vld [vmem:[#allocation4 + $0x1ac] ss:$16 sps:$4 sm:$0xff]  }
  0xe9   :  { %1596 = vmatprep.subr.bf16.mxu1 %v3934_v32  ;;  %v4027_v32 = vld [vmem:[#allocation4 + $0x1c4] ss:$16 sps:$4 sm:$0xff]   ;;  %v4030_v33 = vld [vmem:[#allocation4 + $0x1cc] ss:$16 sps:$4 sm:$0xff]  }
  0xeb   :  { %2465 = vmatpush1.bf16.msra.mxu0 %v3947_v35  ;;  %v4028_v35 = vld [vmem:[#allocation4 + $0x1c8] ss:$16 sps:$4 sm:$0xff]  }
  0xec   :  { %1597 = vmatpush1.bf16.msra.mxu1 %v3932_v34  ;;  %2466 = vmatprep.subr.bf16.mxu0 %v3955_v37  ;;  %v4025_v34 = vld [vmem:[#allocation4 + $0x1c0] ss:$16 sps:$4 sm:$0xff]   ;;  %v4036_v37 = vld [vmem:[#allocation4 + $0x1ec] ss:$16 sps:$4 sm:$0xff]  }
  0xed   :  { %1609 = vmatprep.subr.bf16.mxu1 %v3937_v36  ;;  %v4033_v36 = vld [vmem:[#allocation4 + $0x1e4] ss:$16 sps:$4 sm:$0xff]  }
  0xef   :  { %1599 = vmatmul.mubr.bf16.vlgmr.msra.gmra.mrb[4].mxu1 %v79_v31  ;;  %2467 = vmatpush1.bf16.msra.mxu0 %v3953_v40  ;;  %v4022_v31 = vld [vmem:[#allocation4 + $0x1a8] ss:$16 sps:$4 sm:$0xff]   ;;  %v4039_v40 = vld [vmem:[#allocation4 + $0x204] ss:$16 sps:$4 sm:$0xff]  }
  0xf0   :  { %1610 = vmatpush1.bf16.msra.mxu1 %v3935_v38  ;;  %1641 = vmatprep.mubr.bf16.mxu1 %v4225_v0  ;;  %v3958_v0 = vld [vmem:[#allocation4 + $0x4c] ss:$16 sps:$4 sm:$0xff]   ;;  %v4031_v38 = vld [vmem:[#allocation4 + $0x1e0] ss:$16 sps:$4 sm:$0xff]  }
  0xf1   :  { %1611 = vmatprep.subr.bf16.mxu1 %v3940_v39  ;;  %2468 = vmatprep.subr.bf16.mxu0 %v3961_v41  ;;  %v4034_v39 = vld [vmem:[#allocation4 + $0x1e8] ss:$16 sps:$4 sm:$0xff]   ;;  %v4042_v41 = vld [vmem:[#allocation4 + $0x20c] ss:$16 sps:$4 sm:$0xff]  }
  0xf3   :  { %2469 = vmatpush1.bf16.msra.mxu0 %v3959_v44 }
  0xf4   :  { %1612 = vmatpush1.bf16.msra.mxu1 %v3938_v42  ;;  %2470 = vmatprep.subr.bf16.mxu0 %v3967_v45  ;;  %v284_v42 = vlaneseq  ;;  %v282_v45 = vld [vmem:[%s4536_s2] sm:$0xf] }
  0xf5   :  { %2548 = vmatprep.subr.bf16.mxu1 %v3946_v43 }
  0xf6   :  { %v4360_v43 = vshrl.u32 %v284_v42, 7 }
  0xf7   :  { %2471 = vmatpush1.bf16.msra.mxu0 %v3965_v46 }
  0xf8   :  { %2472 = vmatprep.subr.bf16.mxu0 %v3973_v47  ;;  %v286_v44 = vsub.s32 0, %v4360_v43  ;;  %v290_v46 = vsub.s32 1, %v4360_v43 }
  0xfa   :  { %v287_v47 = vrot.slane %v282_v45, %v286_v44 }
  0xfb   :  { %3333 = vmatmul.mubr.msk.bf16.vlgmr.msra.gmra.mrb[4].mxu1 %vm1304_vm0, %v4309_v15  ;;  %2473 = vmatpush1.bf16.msra.mxu0 %v3971_v50  ;;  %v3970_v15 = vld [vmem:[#allocation4 + $0x8c] ss:$16 sps:$4 sm:$0xff]  }
  0xfc   :  { %2549 = vmatpush1.bf16.msra.mxu1 %v3944_v48  ;;  %2474 = vmatprep.subr.bf16.mxu0 %v3979_v51  ;;  %v291_v48 = vrot.slane %v282_v45, %v290_v46 }
  0xfd   :  { %2550 = vmatprep.subr.bf16.mxu1 %v3952_v49 }
  0xff   :  { %2475 = vmatpush1.bf16.msra.mxu0 %v3977_v53 }
 0x100   :  { %2551 = vmatpush1.bf16.msra.mxu1 %v3950_v52  ;;  %2476 = vmatprep.subr.bf16.mxu0 %v3985_v54 }
 0x101   :  { %2552 = vmatprep.subr.bf16.mxu1 %v3958_v0 }
 0x102   :  { %v4352_v59 = vpop.f32.mrb[0].mxu1 }
 0x103   :  { %v4354_v61 = vpop.f32.mrb[1].mxu1  ;;  %2477 = vmatpush1.bf16.msra.mxu0 %v3983_v57 }
 0x104   :  { %v4356_v63 = vpop.f32.mrb[2].mxu1  ;;  %2553 = vmatpush1.bf16.msra.mxu1 %v3956_v55  ;;  %2478 = vmatprep.subr.bf16.mxu0 %v3991_v58 }
 0x105   :  { %v4358_v1 = vpop.f32.mrb[3].mxu1  ;;  %2554 = vmatprep.subr.bf16.mxu1 %v3964_v56 }
 0x107   :  { %2479 = vmatpush1.bf16.msra.mxu0 %v3989_v62 }
 0x108   :  { %2555 = vmatpush1.bf16.msra.mxu1 %v3962_v60  ;;  %2480 = vmatprep.subr.bf16.mxu0 %v3997_v2 }
 0x109   :  { %2556 = vmatprep.subr.bf16.mxu1 %v3970_v15 }
 0x10b   :  { %2481 = vmatpush1.bf16.msra.mxu0 %v3995_v5 }
 0x10c   :  { %2557 = vmatpush1.bf16.msra.mxu1 %v3968_v3  ;;  %2482 = vmatprep.subr.bf16.mxu0 %v4003_v6 }
 0x10d   :  { %2558 = vmatprep.subr.bf16.mxu1 %v3976_v4 }
 0x10f   :  { %2483 = vmatpush1.bf16.msra.mxu0 %v4001_v9 }
 0x110   :  { %2559 = vmatpush1.bf16.msra.mxu1 %v3974_v7  ;;  %2484 = vmatprep.subr.bf16.mxu0 %v4009_v10  ;;  %v4040_v10 = vld [vmem:[#allocation4 + $0x208] ss:$16 sps:$4 sm:$0xff]  }
 0x111   :  { %2560 = vmatprep.subr.bf16.mxu1 %v3982_v8 }
 0x113   :  { %2485 = vmatpush1.bf16.msra.mxu0 %v4007_v13  ;;  %v4046_v13 = vld [vmem:[#allocation4 + $0x228] ss:$16 sps:$4 sm:$0xff]  }
 0x114   :  { %2561 = vmatpush1.bf16.msra.mxu1 %v3980_v11  ;;  %2486 = vmatprep.subr.bf16.mxu0 %v4015_v14  ;;  %v4045_v11 = vld [vmem:[#allocation4 + $0x224] ss:$16 sps:$4 sm:$0xff]  }
 0x115   :  { %2562 = vmatprep.subr.bf16.mxu1 %v3988_v12  ;;  %v4048_v12 = vld [vmem:[#allocation4 + $0x22c] ss:$16 sps:$4 sm:$0xff]  }
 0x117   :  { %2487 = vmatpush1.bf16.msra.mxu0 %v4013_v18 }
 0x118   :  { %2563 = vmatpush1.bf16.msra.mxu1 %v3986_v16  ;;  %2488 = vmatprep.subr.bf16.mxu0 %v4021_v28  ;;  %v4051_v16 = vld [vmem:[#allocation4 + $0x244] ss:$16 sps:$4 sm:$0xff]  }
 0x119   :  { %2564 = vmatprep.subr.bf16.mxu1 %v3994_v17  ;;  %v4054_v17 = vld [vmem:[#allocation4 + $0x24c] ss:$16 sps:$4 sm:$0xff]  }
 0x11b   :  { %2489 = vmatpush1.bf16.msra.mxu0 %v4019_v30 }
 0x11c   :  { %2565 = vmatpush1.bf16.msra.mxu1 %v3992_v19  ;;  %2490 = vmatprep.subr.bf16.mxu0 %v4027_v32 }
 0x11d   :  { %2566 = vmatprep.subr.bf16.mxu1 %v4000_v20  ;;  %v4049_v20 = vld [vmem:[#allocation4 + $0x240] ss:$16 sps:$4 sm:$0xff]  }
 0x11f   :  { %2491 = vmatpush1.bf16.msra.mxu0 %v4025_v34  ;;  %v4058_v34 = vld [vmem:[#allocation4 + $0x268] ss:$16 sps:$4 sm:$0xff]  }
 0x120   :  { %2567 = vmatpush1.bf16.msra.mxu1 %v3998_v21  ;;  %2492 = vmatprep.subr.bf16.mxu0 %v4033_v36  ;;  %v4052_v21 = vld [vmem:[#allocation4 + $0x248] ss:$16 sps:$4 sm:$0xff]   ;;  %v4063_v36 = vld [vmem:[#allocation4 + $0x284] ss:$16 sps:$4 sm:$0xff]  }
 0x121   :  { %2568 = vmatprep.subr.bf16.mxu1 %v4006_v22 }
 0x123   :  { %2493 = vmatpush1.bf16.msra.mxu0 %v4031_v38 }
 0x124   :  { %2569 = vmatpush1.bf16.msra.mxu1 %v4004_v23  ;;  %2505 = vmatprep.subr.bf16.mxu0 %v4039_v40 }
 0x125   :  { %2570 = vmatprep.subr.bf16.mxu1 %v4012_v24  ;;  %v4057_v24 = vld [vmem:[#allocation4 + $0x264] ss:$16 sps:$4 sm:$0xff]  }
 0x128   :  { %2571 = vmatpush1.bf16.msra.mxu1 %v4010_v25  ;;  %v4060_v25 = vld [vmem:[#allocation4 + $0x26c] ss:$16 sps:$4 sm:$0xff]  }
 0x129   :  { %2572 = vmatprep.subr.bf16.mxu1 %v4018_v26 }
 0x12c   :  { %2573 = vmatpush1.bf16.msra.mxu1 %v4016_v27 }
 0x12d   :  { %2574 = vmatprep.subr.bf16.mxu1 %v4024_v29 }
 0x130   :  { %2575 = vmatpush1.bf16.msra.mxu1 %v4022_v31 }
 0x131   :  { %2576 = vmatprep.subr.bf16.mxu1 %v4030_v33  ;;  %v4055_v33 = vld [vmem:[#allocation4 + $0x260] ss:$16 sps:$4 sm:$0xff]  }
 0x134   :  { %2577 = vmatpush1.bf16.msra.mxu1 %v4028_v35 }
 0x135   :  { %2578 = vmatprep.subr.bf16.mxu1 %v4036_v37  ;;  %v4066_v37 = vld [vmem:[#allocation4 + $0x28c] ss:$16 sps:$4 sm:$0xff]  }
 0x138   :  { %2579 = vmatpush1.bf16.msra.mxu1 %v4034_v39 }
 0x139   :  { %2591 = vmatprep.subr.bf16.mxu1 %v4042_v41 }
 0x1b9   :  { %v1428_v49 = vpop.f32.mrb[0].mxu0 }
 0x1ba   :  { %v3586_v50 = vadd.f32 %v1428_v49, %v287_v47  ;;  %v1430_v51 = vpop.f32.mrb[1].mxu0 }
 0x1bb   :  { %v3588_v52 = vadd.f32 %v1430_v51, %v291_v48  ;;  %v1432_v0 = vpop.f32.mrb[2].mxu0  ;;  %v4072_v51 = vld [vmem:[#allocation4 + $0x2ac] ss:$16 sps:$4 sm:$0xff]  }
 0x1bc   :  { %v3587_v53 = vadd.f32 %v3586_v50, %v4352_v59  ;;  %v3590_v54 = vadd.f32 %v1432_v0, %v287_v47  ;;  %v1434_v55 = vpop.f32.mrb[3].mxu0  ;;  %v4037_v59 = vld [vmem:[#allocation4 + $0x200] ss:$16 sps:$4 sm:$0xff]   ;;  %v4064_v47 = vld [vmem:[#allocation4 + $0x288] ss:$16 sps:$4 sm:$0xff]  }
 0x1bd   :  { %v3589_v56 = vadd.f32 %v3588_v52, %v4354_v61  ;;  %v3592_v57 = vadd.f32 %v1434_v55, %v291_v48  ;;  %v294_v61 = vsub.s32 2, %v4360_v43  ;;  %v4069_v50 = vld [vmem:[#allocation4 + $0x2a4] ss:$16 sps:$4 sm:$0xff]   ;;  %v4067_v52 = vld [vmem:[#allocation4 + $0x2a0] ss:$16 sps:$4 sm:$0xff]  }
 0x1be   :  { %v1652_v58 = vmul.f32 0.01, %v3587_v53  ;;  %v3591_v60 = vadd.f32 %v3590_v54, %v4356_v63  ;;  %v298_v63 = vsub.s32 3, %v4360_v43  ;;  %v4070_v0 = vld [vmem:[#allocation4 + $0x2a8] ss:$16 sps:$4 sm:$0xff]  }
 0x1bf   :  { %v1653_v15 = vmul.f32 0.01, %v3589_v56  ;;  %v3593_v62 = vadd.f32 %v3592_v57, %v4358_v1  ;;  %v4043_v1 = vld [vmem:[#allocation4 + $0x220] ss:$16 sps:$4 sm:$0xff]   ;;  %v295_v14 = vrot.slane %v282_v45, %v294_v61  ;;  %v4078_v54 = vld [vmem:[#allocation4 + $0x2cc] ss:$16 sps:$4 sm:$0xff]  }
 0x1c0   :  { %v1656_v2 = vmul.f32 0.01, %v3591_v60  ;;  %v1660_v4 = vmax.f32 %v3587_v53, %v1652_v58  ;;  %v299_v18 = vrot.slane %v282_v45, %v298_v63  ;;  %v4061_v45 = vld [vmem:[#allocation4 + $0x280] ss:$16 sps:$4 sm:$0xff]   ;;  %v4075_v53 = vld [vmem:[#allocation4 + $0x2c4] ss:$16 sps:$4 sm:$0xff]  }
 0x1c1   :  { %v1657_v3 = vmul.f32 0.01, %v3593_v62  ;;  %v1661_v6 = vmax.f32 %v3589_v56, %v1653_v15  ;;  %v4073_v55 = vld [vmem:[#allocation4 + $0x2c0] ss:$16 sps:$4 sm:$0xff]   ;;  %v4076_v56 = vld [vmem:[#allocation4 + $0x2c8] ss:$16 sps:$4 sm:$0xff]  }
 0x1c2   :  { %v1664_v5 = vmax.f32 %v3591_v60, %v1656_v2  ;;  %v4081_v57 = vld [vmem:[#allocation4 + $0x2e4] ss:$16 sps:$4 sm:$0xff]   ;;  %v4084_v58 = vld [vmem:[#allocation4 + $0x2ec] ss:$16 sps:$4 sm:$0xff]   ;;  %v4079_v60 = vld [vmem:[#allocation4 + $0x2e0] ss:$16 sps:$4 sm:$0xff]  }
 0x1c3   :  { %v1665_v7 = vmax.f32 %v3593_v62, %v1657_v3  ;;  %v4082_v15 = vld [vmem:[#allocation4 + $0x2e8] ss:$16 sps:$4 sm:$0xff]   ;;  %v4087_v62 = vld [vmem:[#allocation4 + $0x304] ss:$16 sps:$4 sm:$0xff]   ;;  %v4090_v2 = vld [vmem:[#allocation4 + $0x30c] ss:$16 sps:$4 sm:$0xff]  }
 0x1c4   :  { %v1668_v8 = vpack.c.bf16 %v1664_v5, %v1660_v4  ;;  %v4085_v3 = vld [vmem:[#allocation4 + $0x300] ss:$16 sps:$4 sm:$0xff]   ;;  %v4088_v4 = vld [vmem:[#allocation4 + $0x308] ss:$16 sps:$4 sm:$0xff]   ;;  %v4093_v5 = vld [vmem:[#allocation4 + $0x324] ss:$16 sps:$4 sm:$0xff]  }
 0x1c5   :  { %v1669_v9 = vpack.c.bf16 %v1665_v7, %v1661_v6  ;;  %v4096_v6 = vld [vmem:[#allocation4 + $0x32c] ss:$16 sps:$4 sm:$0xff]   ;;  %v4091_v7 = vld [vmem:[#allocation4 + $0x320] ss:$16 sps:$4 sm:$0xff]  }
 0x1c7   :  { %2494 = vmatprep.mubr.bf16.mxu0 %v1669_v9  ;;  %2580 = vmatprep.mubr.bf16.mxu1 %v1669_v9  ;;  %v4099_v9 = vld [vmem:[#allocation4 + $0x344] ss:$16 sps:$4 sm:$0xff]  }
 0x1c8   :  { %2495 = vmatmul.mubr.bf16.vlgmr.msra.gmra.mrb[4].mxu0 %v1668_v8  ;;  %2581 = vmatmul.mubr.bf16.vlgmr.msra.gmra.mrb[8].mxu1 %v1668_v8  ;;  %v4094_v8 = vld [vmem:[#allocation4 + $0x328] ss:$16 sps:$4 sm:$0xff]  }
 0x1c9   :  { %2506 = vmatpush1.bf16.msra.mxu0 %v4037_v59  ;;  %2592 = vmatpush1.bf16.msra.mxu1 %v4040_v10  ;;  %v4102_v59 = vld [vmem:[#allocation4 + $0x34c] ss:$16 sps:$4 sm:$0xff]   ;;  %v4097_v10 = vld [vmem:[#allocation4 + $0x340] ss:$16 sps:$4 sm:$0xff]  }
 0x1ca   :  { %2507 = vmatprep.subr.bf16.mxu0 %v4045_v11  ;;  %2593 = vmatprep.subr.bf16.mxu1 %v4048_v12  ;;  %v4100_v11 = vld [vmem:[#allocation4 + $0x348] ss:$16 sps:$4 sm:$0xff]   ;;  %v4105_v12 = vld [vmem:[#allocation4 + $0x364] ss:$16 sps:$4 sm:$0xff]  }
 0x1cd   :  { %2508 = vmatpush1.bf16.msra.mxu0 %v4043_v1  ;;  %2594 = vmatpush1.bf16.msra.mxu1 %v4046_v13  ;;  %v4108_v1 = vld [vmem:[#allocation4 + $0x36c] ss:$16 sps:$4 sm:$0xff]   ;;  %v4103_v13 = vld [vmem:[#allocation4 + $0x360] ss:$16 sps:$4 sm:$0xff]  }
 0x1ce   :  { %v1643_v19 = vpop.f32.mrb[4].mxu1  ;;  %2509 = vmatprep.subr.bf16.mxu0 %v4051_v16  ;;  %2595 = vmatprep.subr.bf16.mxu1 %v4054_v17  ;;  %v4111_v16 = vld [vmem:[#allocation4 + $0x384] ss:$16 sps:$4 sm:$0xff]   ;;  %v4114_v17 = vld [vmem:[#allocation4 + $0x38c] ss:$16 sps:$4 sm:$0xff]  }
 0x1cf   :  { %v3594_v22 = vadd.f32 %v1643_v19, %v295_v14  ;;  %v1645_v23 = vpop.f32.mrb[5].mxu1  ;;  %v4112_v19 = vld [vmem:[#allocation4 + $0x388] ss:$16 sps:$4 sm:$0xff]  }
 0x1d0   :  { %v3595_v26 = vadd.f32 %v1645_v23, %v299_v18  ;;  %v1647_v27 = vpop.f32.mrb[6].mxu1  ;;  %v4118_v23 = vld [vmem:[#allocation4 + $0x3a8] ss:$16 sps:$4 sm:$0xff]  }
 0x1d1   :  { %v1654_v28 = vmul.f32 0.01, %v3594_v22  ;;  %v3596_v29 = vadd.f32 %v1647_v27, %v295_v14  ;;  %v1649_v30 = vpop.f32.mrb[7].mxu1  ;;  %2510 = vmatpush1.bf16.msra.mxu0 %v4049_v20  ;;  %2596 = vmatpush1.bf16.msra.mxu1 %v4052_v21  ;;  %v4106_v14 = vld [vmem:[#allocation4 + $0x368] ss:$16 sps:$4 sm:$0xff]  }
 0x1d2   :  { %v1655_v31 = vmul.f32 0.01, %v3595_v26  ;;  %v3597_v32 = vadd.f32 %v1649_v30, %v299_v18  ;;  %2511 = vmatprep.subr.bf16.mxu0 %v4057_v24  ;;  %2597 = vmatprep.subr.bf16.mxu1 %v4060_v25  ;;  %v4109_v18 = vld [vmem:[#allocation4 + $0x380] ss:$16 sps:$4 sm:$0xff]   ;;  %v4117_v20 = vld [vmem:[#allocation4 + $0x3a4] ss:$16 sps:$4 sm:$0xff]  }
 0x1d3   :  { %v1658_v35 = vmul.f32 0.01, %v3596_v29  ;;  %v1662_v39 = vmax.f32 %v3594_v22, %v1654_v28  ;;  %v4120_v21 = vld [vmem:[#allocation4 + $0x3ac] ss:$16 sps:$4 sm:$0xff]   ;;  %v4115_v22 = vld [vmem:[#allocation4 + $0x3a0] ss:$16 sps:$4 sm:$0xff]  }
 0x1d4   :  { %v1659_v38 = vmul.f32 0.01, %v3597_v32  ;;  %v1663_v41 = vmax.f32 %v3595_v26, %v1655_v31  ;;  %v4123_v24 = vld [vmem:[#allocation4 + $0x3c4] ss:$16 sps:$4 sm:$0xff]   ;;  %v4126_v25 = vld [vmem:[#allocation4 + $0x3cc] ss:$16 sps:$4 sm:$0xff]  }
 0x1d5   :  { %v1666_v40 = vmax.f32 %v3596_v29, %v1658_v35  ;;  %2512 = vmatpush1.bf16.msra.mxu0 %v4055_v33  ;;  %2598 = vmatpush1.bf16.msra.mxu1 %v4058_v34  ;;  %v4121_v26 = vld [vmem:[#allocation4 + $0x3c0] ss:$16 sps:$4 sm:$0xff]   ;;  %v4124_v27 = vld [vmem:[#allocation4 + $0x3c8] ss:$16 sps:$4 sm:$0xff]   ;;  %v4129_v28 = vld [vmem:[#allocation4 + $0x3e4] ss:$16 sps:$4 sm:$0xff]  }
 0x1d6   :  { %v1667_v42 = vmax.f32 %v3597_v32, %v1659_v38  ;;  %2513 = vmatprep.subr.bf16.mxu0 %v4063_v36  ;;  %2599 = vmatprep.subr.bf16.mxu1 %v4066_v37  ;;  %v4132_v29 = vld [vmem:[#allocation4 + $0x3ec] ss:$16 sps:$4 sm:$0xff]   ;;  %v4127_v30 = vld [vmem:[#allocation4 + $0x3e0] ss:$16 sps:$4 sm:$0xff]   ;;  %v4130_v31 = vld [vmem:[#allocation4 + $0x3e8] ss:$16 sps:$4 sm:$0xff]  }
 0x1d7   :  { %v4381_v48 = vpack.c.bf16 %v1666_v40, %v1662_v39  ;;  %v4133_v32 = vld [vmem:[%s4539_s5 + $0x40] sm:$0xff]   ;;  %v4137_v36 = vld [vmem:[%s4539_s5 + $0x48] sm:$0xff]   ;;  %v4141_v40 = vld [vmem:[%s4539_s5 + $0x50] sm:$0xff]  }
 0x1d8   :  { %v1671_v49 = vpack.c.bf16 %v1667_v42, %v1663_v41  ;;  %v4134_v33 = vld [vmem:[%s4539_s5 + $0xc0] sm:$0xff]   ;;  %v4138_v37 = vld [vmem:[%s4539_s5 + $0xc8] sm:$0xff]   ;;  %v4142_v41 = vld [vmem:[%s4539_s5 + $0xd0] sm:$0xff]  }
 0x1d9   :  { %2514 = vmatpush1.bf16.msra.mxu0 %v4061_v45  ;;  %2600 = vmatpush1.bf16.msra.mxu1 %v4064_v47  ;;  %v4135_v34 = vld [vmem:[%s4539_s5] sm:$0xff]   ;;  %v4139_v38 = vld [vmem:[%s4539_s5 + $0x8] sm:$0xff]   ;;  %v4143_v42 = vld [vmem:[%s4539_s5 + $0x10] sm:$0xff]  }
 0x1da   :  { %2537 = vmatprep.mubr.bf16.mxu0 %v1671_v49  ;;  %2623 = vmatprep.mubr.bf16.mxu1 %v1671_v49  ;;  %v4136_v35 = vld [vmem:[%s4539_s5 + $0x80] sm:$0xff]   ;;  %v4140_v39 = vld [vmem:[%s4539_s5 + $0x88] sm:$0xff]   ;;  %v4144_v45 = vld [vmem:[%s4539_s5 + $0x90] sm:$0xff]  }
 0x1db   :  { %2515 = vmatprep.subr.bf16.mxu0 %v4069_v50  ;;  %2601 = vmatprep.subr.bf16.mxu1 %v4072_v51  ;;  %v4145_v47 = vld [vmem:[%s4539_s5 + $0x58] sm:$0xff]   ;;  %v4149_v51 = vld [vmem:[%s4539_s5 + $0x60] sm:$0xff]  }
 0x1dc   :  { %v4147_v49 = vld [vmem:[%s4539_s5 + $0x18] sm:$0xff]  }
 0x1dd   :  { %2516 = vmatpush1.bf16.msra.mxu0 %v4067_v52  ;;  %2602 = vmatpush1.bf16.msra.mxu1 %v4070_v0  ;;  %v4148_v50 = vld [vmem:[%s4539_s5 + $0x98] sm:$0xff]   ;;  %v4150_v52 = vld [vmem:[%s4539_s5 + $0xe0] sm:$0xff]  }
 0x1de   :  { %2517 = vmatprep.subr.bf16.mxu0 %v4075_v53  ;;  %2603 = vmatprep.subr.bf16.mxu1 %v4078_v54  ;;  %v4151_v0 = vld [vmem:[%s4539_s5 + $0x20] sm:$0xff]   ;;  %v4153_v54 = vld [vmem:[%s4539_s5 + $0x68] sm:$0xff]  }
 0x1df   :  { %v4152_v53 = vld [vmem:[%s4539_s5 + $0xa0] sm:$0xff]  }
 0x1e1   :  { %2518 = vmatpush1.bf16.msra.mxu0 %v4073_v55  ;;  %2604 = vmatpush1.bf16.msra.mxu1 %v4076_v56  ;;  %v4154_v55 = vld [vmem:[%s4539_s5 + $0xe8] sm:$0xff]  }
 0x1e2   :  { %2519 = vmatprep.subr.bf16.mxu0 %v4081_v57  ;;  %2605 = vmatprep.subr.bf16.mxu1 %v4084_v58  ;;  %v4155_v56 = vld [vmem:[%s4539_s5 + $0x28] sm:$0xff]   ;;  %v4157_v58 = vld [vmem:[%s4539_s5 + $0x70] sm:$0xff]  }
 0x1e3   :  { %v4156_v57 = vld [vmem:[%s4539_s5 + $0xa8] sm:$0xff]  }
 0x1e5   :  { %2520 = vmatpush1.bf16.msra.mxu0 %v4079_v60  ;;  %2606 = vmatpush1.bf16.msra.mxu1 %v4082_v15  ;;  %v4158_v60 = vld [vmem:[%s4539_s5 + $0xf0] sm:$0xff]  }
 0x1e6   :  { %2521 = vmatprep.subr.bf16.mxu0 %v4087_v62  ;;  %2607 = vmatprep.subr.bf16.mxu1 %v4090_v2  ;;  %v4159_v15 = vld [vmem:[%s4539_s5 + $0x30] sm:$0xff]   ;;  %v4161_v2 = vld [vmem:[%s4539_s5 + $0x78] sm:$0xff]  }
 0x1e7   :  { %v4160_v62 = vld [vmem:[%s4539_s5 + $0xb0] sm:$0xff]  }
 0x1e9   :  { %2522 = vmatpush1.bf16.msra.mxu0 %v4085_v3  ;;  %2608 = vmatpush1.bf16.msra.mxu1 %v4088_v4  ;;  %v4162_v3 = vld [vmem:[%s4539_s5 + $0xf8] sm:$0xff]  }
 0x1ea   :  { %2523 = vmatprep.subr.bf16.mxu0 %v4093_v5  ;;  %2609 = vmatprep.subr.bf16.mxu1 %v4096_v6  ;;  %v4163_v4 = vld [vmem:[%s4539_s5 + $0x38] sm:$0xff]   ;;  %v4226_v6 = vmov 0.0  }
 0x1eb   :  { %v4164_v5 = vld [vmem:[%s4539_s5 + $0xb8] sm:$0xff]  }
 0x1ed   :  { %2524 = vmatpush1.bf16.msra.mxu0 %v4091_v7  ;;  %2610 = vmatpush1.bf16.msra.mxu1 %v4094_v8  ;;  %v1800_v7 = vld [vmem:[%s4538_s4] sm:$0xf] }
 0x1ee   :  { %2525 = vmatprep.subr.bf16.mxu0 %v4099_v9  ;;  %2611 = vmatprep.subr.bf16.mxu1 %v4102_v59  ;;  %v1805_v8 = vrot.slane %v1800_v7, %v286_v44  ;;  %v1813_v9 = vrot.slane %v1800_v7, %v294_v61  ;;  %v1809_v59 = vrot.slane %v1800_v7, %v290_v46 }
 0x1f1   :  { %2526 = vmatpush1.bf16.msra.mxu0 %v4097_v10  ;;  %2612 = vmatpush1.bf16.msra.mxu1 %v4100_v11  ;;  %v1817_v10 = vrot.slane %v1800_v7, %v298_v63 }
 0x1f2   :  { %2527 = vmatprep.subr.bf16.mxu0 %v4105_v12  ;;  %2613 = vmatprep.subr.bf16.mxu1 %v4108_v1 }
 0x1f5   :  { %2528 = vmatpush1.bf16.msra.mxu0 %v4103_v13  ;;  %2614 = vmatpush1.bf16.msra.mxu1 %v4106_v14 }
 0x1f6   :  { %2529 = vmatprep.subr.bf16.mxu0 %v4111_v16  ;;  %2615 = vmatprep.subr.bf16.mxu1 %v4114_v17 }
 0x1f9   :  { %2530 = vmatpush1.bf16.msra.mxu0 %v4109_v18  ;;  %2616 = vmatpush1.bf16.msra.mxu1 %v4112_v19 }
 0x1fa   :  { %2531 = vmatprep.subr.bf16.mxu0 %v4117_v20  ;;  %2617 = vmatprep.subr.bf16.mxu1 %v4120_v21 }
 0x1fd   :  { %2532 = vmatpush1.bf16.msra.mxu0 %v4115_v22  ;;  %2618 = vmatpush1.bf16.msra.mxu1 %v4118_v23 }
 0x1fe   :  { %2533 = vmatprep.subr.bf16.mxu0 %v4123_v24  ;;  %2619 = vmatprep.subr.bf16.mxu1 %v4126_v25 }
 0x201   :  { %2534 = vmatpush1.bf16.msra.mxu0 %v4121_v26  ;;  %2620 = vmatpush1.bf16.msra.mxu1 %v4124_v27 }
 0x202   :  { %2535 = vmatprep.subr.bf16.mxu0 %v4129_v28  ;;  %2621 = vmatprep.subr.bf16.mxu1 %v4132_v29 }
 0x205   :  { %2536 = vmatpush1.bf16.msra.mxu0 %v4127_v30  ;;  %2622 = vmatpush1.bf16.msra.mxu1 %v4130_v31 }
 0x206   :  { %3513 = vmatprep.subr.bf16.mxu0 %v4133_v32  ;;  %3535 = vmatprep.subr.bf16.mxu1 %v4134_v33 }
 0x208   :  { %2538 = vmatmul.mubr.bf16.vlgmr.msra.gmra.mrb[4].mxu0 %v4381_v48  ;;  %2624 = vmatmul.mubr.bf16.vlgmr.msra.gmra.mrb[8].mxu1 %v4381_v48  ;;  %v4146_v48 = vld [vmem:[%s4539_s5 + $0xd8] sm:$0xff]  }
 0x209   :  { %3514 = vmatpush3.bf16.msra.mxu0 %v4135_v34  ;;  %3536 = vmatpush3.bf16.msra.mxu1 %v4136_v35 }
 0x20a   :  { %3515 = vmatprep.subr.bf16.mxu0 %v4137_v36  ;;  %3537 = vmatprep.subr.bf16.mxu1 %v4138_v37 }
 0x20d   :  { %3516 = vmatpush3.bf16.msra.mxu0 %v4139_v38  ;;  %3538 = vmatpush3.bf16.msra.mxu1 %v4140_v39 }
 0x20e   :  { %3517 = vmatprep.subr.bf16.mxu0 %v4141_v40  ;;  %3539 = vmatprep.subr.bf16.mxu1 %v4142_v41 }
 0x211   :  { %3518 = vmatpush3.bf16.msra.mxu0 %v4143_v42  ;;  %3540 = vmatpush3.bf16.msra.mxu1 %v4144_v45  ;;  %v4165_v42 = vld [vmem:[%s4541_s7] sm:$0xff]   ;;  %v4166_v45 = vld [vmem:[%s4541_s7 + $0x8] sm:$0xff]  }
 0x212   :  { %3519 = vmatprep.subr.bf16.mxu0 %v4145_v47  ;;  %3541 = vmatprep.subr.bf16.mxu1 %v4146_v48  ;;  %v4167_v47 = vld [vmem:[%s4541_s7 + $0x10] sm:$0xff]   ;;  %v4168_v48 = vld [vmem:[%s4541_s7 + $0x18] sm:$0xff]  }
 0x215   :  { %3520 = vmatpush3.bf16.msra.mxu0 %v4147_v49  ;;  %3542 = vmatpush3.bf16.msra.mxu1 %v4148_v50  ;;  %v4169_v49 = vld [vmem:[%s4541_s7 + $0x20] sm:$0xff]   ;;  %v4170_v50 = vld [vmem:[%s4541_s7 + $0x28] sm:$0xff]  }
 0x216   :  { %3521 = vmatprep.subr.bf16.mxu0 %v4149_v51  ;;  %3543 = vmatprep.subr.bf16.mxu1 %v4150_v52  ;;  %v4171_v51 = vld [vmem:[%s4541_s7 + $0x30] sm:$0xff]   ;;  %v4172_v52 = vld [vmem:[%s4541_s7 + $0x38] sm:$0xff]  }
 0x219   :  { %3522 = vmatpush3.bf16.msra.mxu0 %v4151_v0  ;;  %3544 = vmatpush3.bf16.msra.mxu1 %v4152_v53 }
 0x21a   :  { %3523 = vmatprep.subr.bf16.mxu0 %v4153_v54  ;;  %3545 = vmatprep.subr.bf16.mxu1 %v4154_v55  ;;  %v3462_v54 = vld [vmem:[%s4540_s6] ss:$0 sm:$0xff] }
 0x21d   :  { %3524 = vmatpush3.bf16.msra.mxu0 %v4155_v56  ;;  %3546 = vmatpush3.bf16.msra.mxu1 %v4156_v57 }
 0x21e   :  { %3525 = vmatprep.subr.bf16.mxu0 %v4157_v58  ;;  %3547 = vmatprep.subr.bf16.mxu1 %v4158_v60 }
 0x221   :  { %3526 = vmatpush3.bf16.msra.mxu0 %v4159_v15  ;;  %3548 = vmatpush3.bf16.msra.mxu1 %v4160_v62 }
 0x222   :  { %3527 = vmatprep.subr.bf16.mxu0 %v4161_v2  ;;  %3549 = vmatprep.subr.bf16.mxu1 %v4162_v3 }
 0x225   :  { %3528 = vmatpush3.bf16.msra.mxu0 %v4163_v4  ;;  %3550 = vmatpush3.bf16.msra.mxu1 %v4164_v5 }
 0x226   :  { %3566 = vmatprep.subr.bf16.mxu0 %v4226_v6 }
 0x2db   :  { %v2539_v11 = vpop.f32.mrb[4].mxu0  ;;  %v2625_v12 = vpop.f32.mrb[8].mxu1 }
 0x2dc   :  { %v3598_v1 = vadd.f32 %v2539_v11, %v1805_v8  ;;  %v3602_v13 = vadd.f32 %v2625_v12, %v1813_v9  ;;  %v2541_v14 = vpop.f32.mrb[5].mxu0  ;;  %v2627_v16 = vpop.f32.mrb[9].mxu1 }
 0x2dd   :  { %v3599_v17 = vadd.f32 %v2541_v14, %v1809_v59  ;;  %v3603_v18 = vadd.f32 %v2627_v16, %v1817_v10  ;;  %v2543_v19 = vpop.f32.mrb[6].mxu0  ;;  %v2629_v20 = vpop.f32.mrb[10].mxu1 }
 0x2de   :  { %v2634_v44 = vmul.f32 0.01, %v3598_v1  ;;  %v2636_v21 = vmul.f32 0.01, %v3602_v13  ;;  %v3600_v22 = vadd.f32 %v2543_v19, %v1805_v8  ;;  %v3604_v61 = vadd.f32 %v2629_v20, %v1813_v9  ;;  %v2545_v23 = vpop.f32.mrb[7].mxu0  ;;  %v2631_v24 = vpop.f32.mrb[11].mxu1 }
 0x2df   :  { %v2635_v46 = vmul.f32 0.01, %v3599_v17  ;;  %v2637_v25 = vmul.f32 0.01, %v3603_v18  ;;  %v3601_v43 = vadd.f32 %v2545_v23, %v1809_v59  ;;  %v3605_v63 = vadd.f32 %v2631_v24, %v1817_v10 }
 0x2e0   :  { %v2638_v26 = vmul.f32 0.01, %v3600_v22  ;;  %v2640_v27 = vmul.f32 0.01, %v3604_v61  ;;  %v2642_v30 = vmax.f32 %v3598_v1, %v2634_v44  ;;  %v2644_v31 = vmax.f32 %v3602_v13, %v2636_v21  ;;  %v3495_v1 = vld [vmem:[%s4542_s8] ss:$0 sm:$0xff] }
 0x2e1   :  { %v2639_v28 = vmul.f32 0.01, %v3601_v43  ;;  %v2641_v29 = vmul.f32 0.01, %v3605_v63  ;;  %v2643_v34 = vmax.f32 %v3599_v17, %v2635_v46  ;;  %v2645_v35 = vmax.f32 %v3603_v18, %v2637_v25 }
 0x2e2   :  { %v2646_v32 = vmax.f32 %v3600_v22, %v2638_v26  ;;  %v2648_v33 = vmax.f32 %v3604_v61, %v2640_v27 }
 0x2e3   :  { %v2647_v36 = vmax.f32 %v3601_v43, %v2639_v28  ;;  %v2649_v37 = vmax.f32 %v3605_v63, %v2641_v29 }
 0x2e4   :  { %v2650_v38 = vpack.c.bf16 %v2646_v32, %v2642_v30  ;;  %v2652_v39 = vpack.c.bf16 %v2648_v33, %v2644_v31 }
 0x2e5   :  { %v2651_v40 = vpack.c.bf16 %v2647_v36, %v2643_v34  ;;  %v2653_v41 = vpack.c.bf16 %v2649_v37, %v2645_v35 }
 0x2e7   :  { %2949 = vmatprep.mubr.bf16.mxu0 %v2651_v40  ;;  %2990 = vmatprep.mubr.bf16.mxu1 %v2653_v41 }
 0x2e8   :  { %2950 = vmatmul.mubr.bf16.vlgmr.msra.gmra.mrb[8].mxu0 %v2650_v38  ;;  %2991 = vmatmul.mubr.bf16.vlgmr.msra.gmra.mrb[12].mxu1 %v2652_v39 }
 0x2e9   :  { %3567 = vmatpush3.bf16.msra.mxu0 %v4165_v42  ;;  %3582 = vmatprep.mubr.msk.bf16.mxu0 %vm4227_vm1, %v4226_v6 }
 0x2ea   :  { %3568 = vmatprep.subr.bf16.mxu0 %v4226_v6 }
 0x2ed   :  { %3569 = vmatpush3.bf16.msra.mxu0 %v4166_v45 }
 0x2ee   :  { %3570 = vmatprep.subr.bf16.mxu0 %v4226_v6 }
 0x2f1   :  { %3571 = vmatpush3.bf16.msra.mxu0 %v4167_v47 }
 0x2f2   :  { %3572 = vmatprep.subr.bf16.mxu0 %v4226_v6 }
 0x2f5   :  { %3573 = vmatpush3.bf16.msra.mxu0 %v4168_v48 }
 0x2f6   :  { %3574 = vmatprep.subr.bf16.mxu0 %v4226_v6 }
 0x2f9   :  { %3575 = vmatpush3.bf16.msra.mxu0 %v4169_v49 }
 0x2fa   :  { %3576 = vmatprep.subr.bf16.mxu0 %v4226_v6 }
 0x2fd   :  { %3577 = vmatpush3.bf16.msra.mxu0 %v4170_v50 }
 0x2fe   :  { %3578 = vmatprep.subr.bf16.mxu0 %v4226_v6 }
 0x301   :  { %3579 = vmatpush3.bf16.msra.mxu0 %v4171_v51 }
 0x302   :  { %3580 = vmatprep.subr.bf16.mxu0 %v4226_v6 }
 0x305   :  { %3581 = vmatpush3.bf16.msra.mxu0 %v4172_v52 }
 0x3bb   :  { %v3529_v0 = vpop.f32.mrb[8].mxu0  ;;  %v3551_v53 = vpop.f32.mrb[12].mxu1 }
 0x3bc   :  { %v3530_v55 = vpop.f32.mrb[9].mxu0  ;;  %v3552_v56 = vpop.f32.mrb[13].mxu1 }
 0x3bd   :  { %v3531_v57 = vadd.f32 %v3530_v55, %v3529_v0  ;;  %v3553_v58 = vadd.f32 %v3552_v56, %v3551_v53  ;;  %v3532_v60 = vpop.f32.mrb[10].mxu0  ;;  %v3554_v15 = vpop.f32.mrb[14].mxu1 }
 0x3be   :  { %v3533_v62 = vpop.f32.mrb[11].mxu0  ;;  %v3555_v2 = vpop.f32.mrb[15].mxu1 }
 0x3bf   :  { %v2952_v3 = vadd.f32 %v3531_v57, %v3462_v54  ;;  %v3534_v4 = vadd.f32 %v3533_v62, %v3532_v60  ;;  %v3556_v5 = vadd.f32 %v3555_v2, %v3554_v15 }
 0x3c1   :  { %v2993_v7 = vadd.f32 %v3553_v58, %v2952_v3  ;;  %v2955_v8 = vadd.f32 %v3534_v4, %v3462_v54 }
 0x3c3   :  { %v2999_v6 = vmul.f32 0.01, %v2993_v7  ;;  %v2996_v9 = vadd.f32 %v3556_v5, %v2955_v8 }
 0x3c5   :  { %v3000_v59 = vmul.f32 0.01, %v2996_v9  ;;  %v3001_v10 = vmax.f32 %v2993_v7, %v2999_v6 }
 0x3c7   :  { %v3002_v11 = vmax.f32 %v2996_v9, %v3000_v59 }
 0x3c9   :  { %v3003_v12 = vpack.c.bf16 %v3002_v11, %v3001_v10 }
 0x3cb   :  { %3583 = vmatmul.mubr.bf16.vlgmr.msra.gmra.mrb[12].mxu0 %v3003_v12 }
 0x49e   :  { %v3109_v13 = vpop.f32.mrb[12].mxu0 }
 0x49f   :  { %v3584_v14 = vpop.f32.mrb[13].mxu0  ;;  %v3110_v17 = vadd.f32 %v3495_v1, %v3109_v13 }
 0x4a0   :  { %v3112_v16 = vpop.f32.mrb[14].mxu0 }
 0x4a1   :  { %v3113_v18 = vadd.f32 %v3495_v1, %v3112_v16  ;;  %v3585_v19 = vpop.f32.mrb[15].mxu0 }
 0x4a3   :  { %v3511_v20 = vpack.c.bf16 %v3113_v18, %v3110_v17 }
 0x4a5   :  { %3512 = vst [vmem:[%s4543_s9] sm:$0xff] %v3511_v20  }
 0x4a6   :  { %3130 = vsyncpa [#allocation3], 1 }
 0x4a7   :  { %3131 = vsyncpa [#allocation5], 1 }

</bundles_post_ra>
